<compile_context>
chip_gen: v7x
topology: tpu7x:2x2x1
jax: 0.10.0
libtpu: 0.0.40
codegen_flags: <defaults>
</compile_context>

<pallas_src>
import functools

import jax
import jax.numpy as jnp
import numpy as np
from jax import lax
from jax.experimental import pallas as pl
from jax.experimental.pallas import tpu as pltpu


LEAD = 128   # lane-aligned origin of the interior inside the padded flat buffers
TAIL = 128   # trailing zero region (must be > W + 2)


# ---------------------------------------------------------------------------
# Fused ResidualGroup kernel
# ---------------------------------------------------------------------------
def make_group_kernel(H, W, C, Csq, num_block, res_scale):
    Wp = W + 2                 # row length in the flattened shifted layout
    N = H * Wp                 # lane width of every activation slab
    TOTAL = LEAD + N + TAIL    # padded flat buffer length

    # im2col tap start offsets: tap k = (dy, dx), shift = (dy-1)*Wp + (dx-1)
    tap_off = [LEAD + (dy - 1) * Wp + (dx - 1) for dy in range(3) for dx in range(3)]

    def kernel(mask_ref, x_ref,
               w1s_ref, b1s_ref, w2s_ref, b2s_ref,
               wds_ref, bds_ref, wus_ref, bus_ref, wf_ref, bf_ref,
               out_ref,
               ypad_ref, ybf_ref, hbf_ref, patch_ref):
        j = pl.program_id(1)   # 0..num_block-1 = RCAB blocks, num_block = final conv

        def conv3x3(src_bf_ref, w_bf16, bias_f32):
            """3x3 SAME conv: 9 lane-shifted bf16 slabs -> (9C, N) patch -> one MXU dot."""
            for k in range(9):
                patch_ref[k * C:(k + 1) * C, :] = src_bf_ref[:, tap_off[k]:tap_off[k] + N]
            acc = jnp.dot(w_bf16, patch_ref[...],
                          preferred_element_type=jnp.float32)        # (C, N) f32
            return acc + bias_f32                                    # bias (C,1) -> lanes

        # ---- per-image init: zero only the halo head/tail, load x into interior ----
        @pl.when(j == 0)
        def _init():
            ypad_ref[:, :LEAD] = jnp.zeros((C, LEAD), jnp.float32)
            ypad_ref[:, LEAD + N:] = jnp.zeros((C, TAIL), jnp.float32)
            hbf_ref[:, :LEAD] = jnp.zeros((C, LEAD), jnp.bfloat16)
            hbf_ref[:, LEAD + N:] = jnp.zeros((C, TAIL), jnp.bfloat16)
            ypad_ref[:, LEAD:LEAD + N] = x_ref[0]          # aligned full-width store

        # ---- RCAB block j -------------------------------------------------------
        @pl.when(j < num_block)
        def _rcab():
            mask = mask_ref[...]                           # (1, N): zero on garbage cols

            # conv1 + ReLU (single bf16 cast of the whole padded activation)
            ybf_ref[...] = ypad_ref[...].astype(jnp.bfloat16)
            h1 = jnp.maximum(conv3x3(ybf_ref, w1s_ref[j], b1s_ref[j]), 0.0) * mask
            # stage h1 (bf16, masked -> halo of the padded view stays zero)
            hbf_ref[:, LEAD:LEAD + N] = h1.astype(jnp.bfloat16)
            # conv2 (masked so pooling is exact and the y writeback keeps its halo zero)
            h2 = conv3x3(hbf_ref, w2s_ref[j], b2s_ref[j]) * mask       # (C, N) f32

            # channel attention on VPU/XLU: pool -> fc -> ReLU -> fc -> sigmoid
            pooled = jnp.sum(h2, axis=1, keepdims=True)                # (C, 1); 1/HW in wds
            z = jnp.maximum(
                jnp.sum(wds_ref[j] * pooled, axis=0, keepdims=True) + bds_ref[j],
                0.0)                                                   # (1, Csq)
            s = jax.nn.sigmoid(
                jnp.sum(wus_ref[j] * z, axis=1, keepdims=True) + bus_ref[j])  # (C, 1)

            # short residual; resident activation stays in the padded f32 buffer
            y_in = ypad_ref[:, LEAD:LEAD + N]                          # aligned load
            ypad_ref[:, LEAD:LEAD + N] = h2 * (s * res_scale) + y_in   # aligned store

        # ---- final group conv + long residual -----------------------------------
        @pl.when(j == num_block)
        def _final():
            ybf_ref[...] = ypad_ref[...].astype(jnp.bfloat16)
            r = conv3x3(ybf_ref, wf_ref[...], bf_ref[...])             # (C, N) f32
            out_ref[0] = r + x_ref[0]        # garbage cols are stripped in the wrapper

    return kernel


# ---------------------------------------------------------------------------
# Parameter packing + pallas_call wrapper
# ---------------------------------------------------------------------------
def pack_group_params(params, H, W):
    blocks = params["blocks"]
    nb = len(blocks)

    def conv_w(w):
        # OIHW (Cout, Cin, 3, 3) -> (Cout, 9*Cin) bf16, column = (dy*3+dx)*Cin + cin
        cout, cin = w.shape[0], w.shape[1]
        return jnp.transpose(w, (0, 2, 3, 1)).reshape(cout, 9 * cin).astype(jnp.bfloat16)

    inv_hw = 1.0 / (H * W)   # fold global-average-pool mean into the first CA weight
    packed = dict(
        w1s=jnp.stack([conv_w(b["w1"]) for b in blocks]),            # (nb, C, 9C) bf16
        b1s=jnp.stack([b["b1"].reshape(-1, 1) for b in blocks]),     # (nb, C, 1)  f32
        w2s=jnp.stack([conv_w(b["w2"]) for b in blocks]),
        b2s=jnp.stack([b["b2"].reshape(-1, 1) for b in blocks]),
        wds=jnp.stack([b["wd"] for b in blocks]) * inv_hw,           # (nb, C, Csq)
        bds=jnp.stack([b["bd"].reshape(1, -1) for b in blocks]),     # (nb, 1, Csq)
        wus=jnp.stack([b["wu"].T for b in blocks]),                  # (nb, C, Csq)
        bus=jnp.stack([b["bu"].reshape(-1, 1) for b in blocks]),     # (nb, C, 1)
        wf=conv_w(params["w_conv"]),                                 # (C, 9C) bf16
        bf=params["b_conv"].reshape(-1, 1),                          # (C, 1)  f32
    )
    return packed, nb


def _pad_tile(shape, dtype_bytes):
    """VMEM bytes of a block after (sublane, lane) layout padding."""
    if len(shape) == 1:
        shape = (1,) + tuple(shape)
    *lead, s, l = shape
    sub = 8 * (4 // dtype_bytes)
    s = -(-s // sub) * sub
    l = -(-l // 128) * 128
    n = s * l * dtype_bytes
    for d in lead:
        n *= d
    return n


def _vmem_limit_bytes(C, N, TOTAL, nb, Csq):
    blocks = [
        ((1, N), 4), ((1, C, N), 4), ((1, C, N), 4),                       # mask, x, out
        ((nb, C, 9 * C), 2), ((nb, C, 1), 4),
        ((nb, C, 9 * C), 2), ((nb, C, 1), 4),
        ((nb, C, Csq), 4), ((nb, 1, Csq), 4), ((nb, C, Csq), 4), ((nb, C, 1), 4),
        ((C, 9 * C), 2), ((C, 1), 4),
    ]
    est = sum(2 * _pad_tile(s, b) for s, b in blocks)                      # double-buffered
    est += _pad_tile((C, TOTAL), 4) + 2 * _pad_tile((C, TOTAL), 2)         # scratch
    est += _pad_tile((9 * C, N), 2)
    est = int(1.5 * est) + (4 << 20)
    return max(32 << 20, min(64 << 20, est))


def residual_group_forward(x, params, res_scale):
    """ResidualGroup.forward on an NCHW input: res = conv(residual_group(x)); res + x."""
    B, C, H, W = x.shape
    Wp = W + 2
    N = H * Wp
    TOTAL = LEAD + N + TAIL
    # Whole-image residency; wide images need strip tiling (see TODO at top of file).
    assert Wp + 1 <= LEAD, "W too large for the whole-image flattened-shift layout"

    p, nb = pack_group_params(params, H, W)
    Csq = p["wds"].shape[-1]

    # input in the flattened shifted layout: 2 zero cols appended per row, rows flattened
    xf = jnp.pad(x, ((0, 0), (0, 0), (0, 0), (0, 2))).reshape(B, C, N)
    # mask of valid (non-garbage) columns of that layout
    mask = (jnp.arange(N, dtype=jnp.int32) % Wp < W).astype(jnp.float32).reshape(1, N)

    kernel = make_group_kernel(H, W, C, Csq, nb, res_scale)

    c2 = lambda b, j: (0, 0)
    c3 = lambda b, j: (0, 0, 0)

    out_flat = pl.pallas_call(
        kernel,
        out_shape=jax.ShapeDtypeStruct((B, C, N), jnp.float32),
        grid=(B, nb + 1),
        in_specs=[
            pl.BlockSpec((1, N), c2),                          # mask (resident)
            pl.BlockSpec((1, C, N), lambda b, j: (b, 0, 0)),   # x (once per image)
            # stacked group weights: constant index maps -> DMA'd once, resident in
            # VMEM, selected by block id inside the kernel.
            pl.BlockSpec((nb, C, 9 * C), c3),                  # w1s (bf16)
            pl.BlockSpec((nb, C, 1), c3),                      # b1s
            pl.BlockSpec((nb, C, 9 * C), c3),                  # w2s (bf16)
            pl.BlockSpec((nb, C, 1), c3),                      # b2s
            pl.BlockSpec((nb, C, Csq), c3),                    # wds (1/HW folded)
            pl.BlockSpec((nb, 1, Csq), c3),                    # bds
            pl.BlockSpec((nb, C, Csq), c3),                    # wus (pre-transposed)
            pl.BlockSpec((nb, C, 1), c3),                      # bus
            pl.BlockSpec((C, 9 * C), c2),                      # wf  (bf16)
            pl.BlockSpec((C, 1), c2),                          # bf
        ],
        out_specs=pl.BlockSpec((1, C, N), lambda b, j: (b, 0, 0)),
        scratch_shapes=[
            pltpu.VMEM((C, TOTAL), jnp.float32),      # resident padded activation y (f32)
            pltpu.VMEM((C, TOTAL), jnp.bfloat16),     # bf16 cast of y (conv1 / final conv)
            pltpu.VMEM((C, TOTAL), jnp.bfloat16),     # padded bf16 h1 (conv2 input)
            pltpu.VMEM((9 * C, N), jnp.bfloat16),     # im2col patch (9C, N)
        ],
        compiler_params=pltpu.CompilerParams(
            dimension_semantics=("parallel", "arbitrary"),
            vmem_limit_bytes=_vmem_limit_bytes(C, N, TOTAL, nb, Csq),
        ),
    )(mask, xf, p["w1s"], p["b1s"], p["w2s"], p["b2s"],
      p["wds"], p["bds"], p["wus"], p["bus"], p["wf"], p["bf"])

    # strip the 2 garbage columns per row: (B, C, N) -> (B, C, H, W)
    return out_flat.reshape(B, C, H, Wp)[:, :, :, :W]


# ---------------------------------------------------------------------------
# Pure-JAX references (for correctness checks), NCHW like the PyTorch module
# ---------------------------------------------------------------------------
def _conv3x3_ref(x, w, b, mxu_bf16):
    if mxu_bf16:
        x = x.astype(jnp.bfloat16)
        w = w.astype(jnp.bfloat16)
    y = lax.conv_general_dilated(
        x, w, window_strides=(1, 1), padding="SAME",
        dimension_numbers=("NCHW", "OIHW", "NCHW"),
        preferred_element_type=jnp.float32,
        precision=lax.Precision.HIGHEST)
    return y + b.reshape(1, -1, 1, 1)


def residual_group_ref(x, params, res_scale, mxu_bf16=False):
    y = x
    for blk in params["blocks"]:
        h = jax.nn.relu(_conv3x3_ref(y, blk["w1"], blk["b1"], mxu_bf16))
        h = _conv3x3_ref(h, blk["w2"], blk["b2"], mxu_bf16)
        pooled = jnp.mean(h, axis=(2, 3))                                   # (B, C)
        z = jax.nn.relu(pooled @ blk["wd"] + blk["bd"])                     # (B, Csq)
        s = jax.nn.sigmoid(z @ blk["wu"] + blk["bu"])                       # (B, C)
        y = h * s[:, :, None, None] * res_scale + y
    res = _conv3x3_ref(y, params["w_conv"], params["b_conv"], mxu_bf16)
    return res + x


# ---------------------------------------------------------------------------
# Deterministic parameter init (shapes match the nn.Conv2d layers of the module)
# ---------------------------------------------------------------------------
def init_params(key, num_feat, squeeze_factor, num_block):
    C = num_feat
    Csq = num_feat // squeeze_factor
    scale = 0.05

    def normal(k, shape):
        return scale * jax.random.normal(k, shape, jnp.float32)

    blocks = []
    for i in range(num_block):
        ks = jax.random.split(jax.random.fold_in(key, i), 8)
        blocks.append(dict(
            w1=normal(ks[0], (C, C, 3, 3)), b1=normal(ks[1], (C,)),
            w2=normal(ks[2], (C, C, 3, 3)), b2=normal(ks[3], (C,)),
            wd=normal(ks[4], (C, Csq)), bd=normal(ks[5], (Csq,)),
            wu=normal(ks[6], (Csq, C)), bu=normal(ks[7], (C,)),
        ))
    kc1, kc2 = jax.random.split(jax.random.fold_in(key, 10_000))
    return dict(blocks=blocks,
                w_conv=normal(kc1, (C, C, 3, 3)),
                b_conv=normal(kc2, (C,)))


# ---------------------------------------------------------------------------
if __name__ == "__main__":
    B, H, W = 2, 16, 16
    num_feat, squeeze_factor, num_block = 32, 4, 2
    res_scale = 0.7

    key = jax.random.PRNGKey(0)
    kx, kp = jax.random.split(key)
    # NCHW input, exactly as the PyTorch module expects
    x = jax.random.normal(kx, (B, num_feat, H, W), jnp.float32)
    params = init_params(kp, num_feat, squeeze_factor, num_block)

    fwd = jax.jit(functools.partial(residual_group_forward, res_scale=res_scale))
    out = jax.block_until_ready(fwd(x, params))

    # 1) matched-precision reference (bf16 conv inputs, f32 accumulation): tight check
    ref_bf16 = residual_group_ref(x, params, res_scale, mxu_bf16=True)
    np.testing.assert_allclose(np.asarray(out), np.asarray(ref_bf16),
                               rtol=5e-3, atol=5e-3)

    # 2) full-f32 module semantics: loose check (kernel uses bf16 MXU inputs by design)
    ref_f32 = residual_group_ref(x, params, res_scale, mxu_bf16=False)
    np.testing.assert_allclose(np.asarray(out), np.asarray(ref_f32),
                               rtol=6e-2, atol=6e-2)

    print("KERNEL_OK")
</pallas_src>

<mosaic_0001>
module attributes {stable_mosaic.version = 11 : i64} {
  func.func @kernel(%arg0: i32, %arg1: i32, %arg2: memref<1x288xf32, #tpu.memory_space<vmem>>, %arg3: memref<1x32x288xf32, #tpu.memory_space<vmem>>, %arg4: memref<2x32x288xbf16, #tpu.memory_space<vmem>>, %arg5: memref<2x32x1xf32, #tpu.memory_space<vmem>>, %arg6: memref<2x32x288xbf16, #tpu.memory_space<vmem>>, %arg7: memref<2x32x1xf32, #tpu.memory_space<vmem>>, %arg8: memref<2x32x8xf32, #tpu.memory_space<vmem>>, %arg9: memref<2x1x8xf32, #tpu.memory_space<vmem>>, %arg10: memref<2x32x8xf32, #tpu.memory_space<vmem>>, %arg11: memref<2x32x1xf32, #tpu.memory_space<vmem>>, %arg12: memref<32x288xbf16, #tpu.memory_space<vmem>>, %arg13: memref<32x1xf32, #tpu.memory_space<vmem>>, %arg14: memref<1x32x288xf32, #tpu.memory_space<vmem>>, %arg15: memref<32x544xf32, #tpu.memory_space<vmem>>, %arg16: memref<32x544xbf16, #tpu.memory_space<vmem>>, %arg17: memref<32x544xbf16, #tpu.memory_space<vmem>>, %arg18: memref<288x288xbf16, #tpu.memory_space<vmem>>) attributes {dimension_semantics = [#tpu.dimension_semantics<parallel>, #tpu.dimension_semantics<arbitrary>], iteration_bounds = array<i64: 2, 3>, scalar_prefetch = 0 : i64, scratch_operands = 4 : i64, tpu.core_type = #tpu.core_type<tc>, window_params = [{pipeline_mode = #tpu.pipeline_mode<synchronous>, transform_indices = @transform_0, window_bounds = array<i64: 1, 288>}, {transform_indices = @transform_1, window_bounds = array<i64: 1, 32, 288>}, {pipeline_mode = #tpu.pipeline_mode<synchronous>, transform_indices = @transform_2, window_bounds = array<i64: 2, 32, 288>}, {pipeline_mode = #tpu.pipeline_mode<synchronous>, transform_indices = @transform_3, window_bounds = array<i64: 2, 32, 1>}, {pipeline_mode = #tpu.pipeline_mode<synchronous>, transform_indices = @transform_4, window_bounds = array<i64: 2, 32, 288>}, {pipeline_mode = #tpu.pipeline_mode<synchronous>, transform_indices = @transform_5, window_bounds = array<i64: 2, 32, 1>}, {pipeline_mode = #tpu.pipeline_mode<synchronous>, transform_indices = @transform_6, window_bounds = array<i64: 2, 32, 8>}, {pipeline_mode = #tpu.pipeline_mode<synchronous>, transform_indices = @transform_7, window_bounds = array<i64: 2, 1, 8>}, {pipeline_mode = #tpu.pipeline_mode<synchronous>, transform_indices = @transform_8, window_bounds = array<i64: 2, 32, 8>}, {pipeline_mode = #tpu.pipeline_mode<synchronous>, transform_indices = @transform_9, window_bounds = array<i64: 2, 32, 1>}, {pipeline_mode = #tpu.pipeline_mode<synchronous>, transform_indices = @transform_10, window_bounds = array<i64: 32, 288>}, {pipeline_mode = #tpu.pipeline_mode<synchronous>, transform_indices = @transform_11, window_bounds = array<i64: 32, 1>}, {transform_indices = @transform_12, window_bounds = array<i64: 1, 32, 288>}]} {
    %c0_i32 = arith.constant 0 : i32
    %0 = arith.cmpi eq, %arg1, %c0_i32 : i32
    %1 = arith.extui %0 : i1 to i32
    %c0_i32_0 = arith.constant 0 : i32
    %2 = arith.cmpi ne, %1, %c0_i32_0 : i32
    scf.if %2 {
      %cst = arith.constant 0.000000e+00 : f32
      %9 = vector.broadcast %cst : f32 to vector<32x128xf32>
      %c0 = arith.constant 0 : index
      %c0_4 = arith.constant 0 : index
      %10 = vector.load %arg15[%c0, %c0_4] : memref<32x544xf32, #tpu.memory_space<vmem>>, vector<32x128xf32>
      tpu.vector_store %arg15[%c0, %c0_4], %9 {strides = array<i32>} : memref<32x544xf32, #tpu.memory_space<vmem>>, vector<32x128xf32>,
      %cst_5 = arith.constant 0.000000e+00 : f32
      %11 = vector.broadcast %cst_5 : f32 to vector<32x128xf32>
      %c0_6 = arith.constant 0 : index
      %c416 = arith.constant 416 : index
      %12 = vector.load %arg15[%c0_6, %c416] : memref<32x544xf32, #tpu.memory_space<vmem>>, vector<32x128xf32>
      tpu.vector_store %arg15[%c0_6, %c416], %11 {strides = array<i32>} : memref<32x544xf32, #tpu.memory_space<vmem>>, vector<32x128xf32>,
      %cst_7 = arith.constant 0.000000e+00 : bf16
      %13 = vector.broadcast %cst_7 : bf16 to vector<32x128xbf16>
      %c0_8 = arith.constant 0 : index
      %c0_9 = arith.constant 0 : index
      %14 = vector.load %arg17[%c0_8, %c0_9] : memref<32x544xbf16, #tpu.memory_space<vmem>>, vector<32x128xbf16>
      tpu.vector_store %arg17[%c0_8, %c0_9], %13 {strides = array<i32>} : memref<32x544xbf16, #tpu.memory_space<vmem>>, vector<32x128xbf16>,
      %cst_10 = arith.constant 0.000000e+00 : bf16
      %15 = vector.broadcast %cst_10 : bf16 to vector<32x128xbf16>
      %c0_11 = arith.constant 0 : index
      %c416_12 = arith.constant 416 : index
      %16 = vector.load %arg17[%c0_11, %c416_12] : memref<32x544xbf16, #tpu.memory_space<vmem>>, vector<32x128xbf16>
      tpu.vector_store %arg17[%c0_11, %c416_12], %15 {strides = array<i32>} : memref<32x544xbf16, #tpu.memory_space<vmem>>, vector<32x128xbf16>,
      %c0_13 = arith.constant 0 : index
      %c0_14 = arith.constant 0 : index
      %c0_15 = arith.constant 0 : index
      %17 = vector.load %arg3[%c0_13, %c0_14, %c0_15] : memref<1x32x288xf32, #tpu.memory_space<vmem>>, vector<1x32x288xf32>
      %18 = vector.shape_cast %17 : vector<1x32x288xf32> to vector<32x288xf32>
      %c0_16 = arith.constant 0 : index
      %c128 = arith.constant 128 : index
      %19 = vector.load %arg15[%c0_16, %c128] : memref<32x544xf32, #tpu.memory_space<vmem>>, vector<32x288xf32>
      tpu.vector_store %arg15[%c0_16, %c128], %18 {strides = array<i32>} : memref<32x544xf32, #tpu.memory_space<vmem>>, vector<32x288xf32>,
    } else {
    }
    %c2_i32 = arith.constant 2 : i32
    %3 = arith.cmpi slt, %arg1, %c2_i32 : i32
    %4 = arith.extui %3 : i1 to i32
    %c0_i32_1 = arith.constant 0 : i32
    %5 = arith.cmpi ne, %4, %c0_i32_1 : i32
    scf.if %5 {
      %c0 = arith.constant 0 : index
      %c0_4 = arith.constant 0 : index
      %9 = vector.load %arg2[%c0, %c0_4] : memref<1x288xf32, #tpu.memory_space<vmem>>, vector<1x288xf32>
      %c0_5 = arith.constant 0 : index
      %c0_6 = arith.constant 0 : index
      %10 = vector.load %arg15[%c0_5, %c0_6] : memref<32x544xf32, #tpu.memory_space<vmem>>, vector<32x544xf32>
      %11 = arith.truncf %10 : vector<32x544xf32> to vector<32x544xbf16>
      %c0_7 = arith.constant 0 : index
      %c0_8 = arith.constant 0 : index
      %12 = vector.load %arg16[%c0_7, %c0_8] : memref<32x544xbf16, #tpu.memory_space<vmem>>, vector<32x544xbf16>
      tpu.vector_store %arg16[%c0_7, %c0_8], %11 {strides = array<i32>} : memref<32x544xbf16, #tpu.memory_space<vmem>>, vector<32x544xbf16>,
      %13 = arith.index_cast %arg1 : i32 to index
      %c0_9 = arith.constant 0 : index
      %c0_10 = arith.constant 0 : index
      %14 = vector.load %arg4[%13, %c0_9, %c0_10] : memref<2x32x288xbf16, #tpu.memory_space<vmem>>, vector<1x32x288xbf16>
      %15 = vector.shape_cast %14 : vector<1x32x288xbf16> to vector<32x288xbf16>
      %16 = arith.index_cast %arg1 : i32 to index
      %c0_11 = arith.constant 0 : index
      %c0_12 = arith.constant 0 : index
      %17 = vector.load %arg5[%16, %c0_11, %c0_12] : memref<2x32x1xf32, #tpu.memory_space<vmem>>, vector<1x32x1xf32>
      %18 = vector.shape_cast %17 : vector<1x32x1xf32> to vector<32x1xf32>
      %c0_13 = arith.constant 0 : index
      %c109 = arith.constant 109 : index
      %19 = vector.load %arg16[%c0_13, %c109] : memref<32x544xbf16, #tpu.memory_space<vmem>>, vector<32x288xbf16>
      %c0_14 = arith.constant 0 : index
      %c0_15 = arith.constant 0 : index
      %20 = vector.load %arg18[%c0_14, %c0_15] : memref<288x288xbf16, #tpu.memory_space<vmem>>, vector<32x288xbf16>
      tpu.vector_store %arg18[%c0_14, %c0_15], %19 {strides = array<i32>} : memref<288x288xbf16, #tpu.memory_space<vmem>>, vector<32x288xbf16>,
      %c0_16 = arith.constant 0 : index
      %c110 = arith.constant 110 : index
      %21 = vector.load %arg16[%c0_16, %c110] : memref<32x544xbf16, #tpu.memory_space<vmem>>, vector<32x288xbf16>
      %c32 = arith.constant 32 : index
      %c0_17 = arith.constant 0 : index
      %22 = vector.load %arg18[%c32, %c0_17] : memref<288x288xbf16, #tpu.memory_space<vmem>>, vector<32x288xbf16>
      tpu.vector_store %arg18[%c32, %c0_17], %21 {strides = array<i32>} : memref<288x288xbf16, #tpu.memory_space<vmem>>, vector<32x288xbf16>,
      %c0_18 = arith.constant 0 : index
      %c111 = arith.constant 111 : index
      %23 = vector.load %arg16[%c0_18, %c111] : memref<32x544xbf16, #tpu.memory_space<vmem>>, vector<32x288xbf16>
      %c64 = arith.constant 64 : index
      %c0_19 = arith.constant 0 : index
      %24 = vector.load %arg18[%c64, %c0_19] : memref<288x288xbf16, #tpu.memory_space<vmem>>, vector<32x288xbf16>
      tpu.vector_store %arg18[%c64, %c0_19], %23 {strides = array<i32>} : memref<288x288xbf16, #tpu.memory_space<vmem>>, vector<32x288xbf16>,
      %c0_20 = arith.constant 0 : index
      %c127 = arith.constant 127 : index
      %25 = vector.load %arg16[%c0_20, %c127] : memref<32x544xbf16, #tpu.memory_space<vmem>>, vector<32x288xbf16>
      %c96 = arith.constant 96 : index
      %c0_21 = arith.constant 0 : index
      %26 = vector.load %arg18[%c96, %c0_21] : memref<288x288xbf16, #tpu.memory_space<vmem>>, vector<32x288xbf16>
      tpu.vector_store %arg18[%c96, %c0_21], %25 {strides = array<i32>} : memref<288x288xbf16, #tpu.memory_space<vmem>>, vector<32x288xbf16>,
      %c0_22 = arith.constant 0 : index
      %c128 = arith.constant 128 : index
      %27 = vector.load %arg16[%c0_22, %c128] : memref<32x544xbf16, #tpu.memory_space<vmem>>, vector<32x288xbf16>
      %c128_23 = arith.constant 128 : index
      %c0_24 = arith.constant 0 : index
      %28 = vector.load %arg18[%c128_23, %c0_24] : memref<288x288xbf16, #tpu.memory_space<vmem>>, vector<32x288xbf16>
      tpu.vector_store %arg18[%c128_23, %c0_24], %27 {strides = array<i32>} : memref<288x288xbf16, #tpu.memory_space<vmem>>, vector<32x288xbf16>,
      %c0_25 = arith.constant 0 : index
      %c129 = arith.constant 129 : index
      %29 = vector.load %arg16[%c0_25, %c129] : memref<32x544xbf16, #tpu.memory_space<vmem>>, vector<32x288xbf16>
      %c160 = arith.constant 160 : index
      %c0_26 = arith.constant 0 : index
      %30 = vector.load %arg18[%c160, %c0_26] : memref<288x288xbf16, #tpu.memory_space<vmem>>, vector<32x288xbf16>
      tpu.vector_store %arg18[%c160, %c0_26], %29 {strides = array<i32>} : memref<288x288xbf16, #tpu.memory_space<vmem>>, vector<32x288xbf16>,
      %c0_27 = arith.constant 0 : index
      %c145 = arith.constant 145 : index
      %31 = vector.load %arg16[%c0_27, %c145] : memref<32x544xbf16, #tpu.memory_space<vmem>>, vector<32x288xbf16>
      %c192 = arith.constant 192 : index
      %c0_28 = arith.constant 0 : index
      %32 = vector.load %arg18[%c192, %c0_28] : memref<288x288xbf16, #tpu.memory_space<vmem>>, vector<32x288xbf16>
      tpu.vector_store %arg18[%c192, %c0_28], %31 {strides = array<i32>} : memref<288x288xbf16, #tpu.memory_space<vmem>>, vector<32x288xbf16>,
      %c0_29 = arith.constant 0 : index
      %c146 = arith.constant 146 : index
      %33 = vector.load %arg16[%c0_29, %c146] : memref<32x544xbf16, #tpu.memory_space<vmem>>, vector<32x288xbf16>
      %c224 = arith.constant 224 : index
      %c0_30 = arith.constant 0 : index
      %34 = vector.load %arg18[%c224, %c0_30] : memref<288x288xbf16, #tpu.memory_space<vmem>>, vector<32x288xbf16>
      tpu.vector_store %arg18[%c224, %c0_30], %33 {strides = array<i32>} : memref<288x288xbf16, #tpu.memory_space<vmem>>, vector<32x288xbf16>,
      %c0_31 = arith.constant 0 : index
      %c147 = arith.constant 147 : index
      %35 = vector.load %arg16[%c0_31, %c147] : memref<32x544xbf16, #tpu.memory_space<vmem>>, vector<32x288xbf16>
      %c256 = arith.constant 256 : index
      %c0_32 = arith.constant 0 : index
      %36 = vector.load %arg18[%c256, %c0_32] : memref<288x288xbf16, #tpu.memory_space<vmem>>, vector<32x288xbf16>
      tpu.vector_store %arg18[%c256, %c0_32], %35 {strides = array<i32>} : memref<288x288xbf16, #tpu.memory_space<vmem>>, vector<32x288xbf16>,
      %c0_33 = arith.constant 0 : index
      %c0_34 = arith.constant 0 : index
      %37 = vector.load %arg18[%c0_33, %c0_34] : memref<288x288xbf16, #tpu.memory_space<vmem>>, vector<288x288xbf16>
      %cst = arith.constant dense<0.000000e+00> : vector<32x288xf32>
      %38 = tpu.matmul %15, %37, %cst {dimension_numbers = #tpu.dot_dimension_numbers<[1], [0], [0], [1], [0, 0, 1, 1], [], []>} : vector<32x288xbf16>, vector<288x288xbf16>, vector<32x288xf32> -> vector<32x288xf32>
      %39 = vector.broadcast %18 : vector<32x1xf32> to vector<32x288xf32>
      %40 = arith.addf %38, %39 : vector<32x288xf32>
      %cst_35 = arith.constant 0.000000e+00 : f32
      %41 = vector.broadcast %cst_35 : f32 to vector<32x288xf32>
      %42 = arith.maximumf %40, %41 : vector<32x288xf32>
      %43 = vector.broadcast %9 : vector<1x288xf32> to vector<32x288xf32>
      %44 = arith.mulf %42, %43 : vector<32x288xf32>
      %45 = arith.truncf %44 : vector<32x288xf32> to vector<32x288xbf16>
      %c0_36 = arith.constant 0 : index
      %c128_37 = arith.constant 128 : index
      %46 = vector.load %arg17[%c0_36, %c128_37] : memref<32x544xbf16, #tpu.memory_space<vmem>>, vector<32x288xbf16>
      tpu.vector_store %arg17[%c0_36, %c128_37], %45 {strides = array<i32>} : memref<32x544xbf16, #tpu.memory_space<vmem>>, vector<32x288xbf16>,
      %47 = arith.index_cast %arg1 : i32 to index
      %c0_38 = arith.constant 0 : index
      %c0_39 = arith.constant 0 : index
      %48 = vector.load %arg6[%47, %c0_38, %c0_39] : memref<2x32x288xbf16, #tpu.memory_space<vmem>>, vector<1x32x288xbf16>
      %49 = vector.shape_cast %48 : vector<1x32x288xbf16> to vector<32x288xbf16>
      %50 = arith.index_cast %arg1 : i32 to index
      %c0_40 = arith.constant 0 : index
      %c0_41 = arith.constant 0 : index
      %51 = vector.load %arg7[%50, %c0_40, %c0_41] : memref<2x32x1xf32, #tpu.memory_space<vmem>>, vector<1x32x1xf32>
      %52 = vector.shape_cast %51 : vector<1x32x1xf32> to vector<32x1xf32>
      %c0_42 = arith.constant 0 : index
      %c109_43 = arith.constant 109 : index
      %53 = vector.load %arg17[%c0_42, %c109_43] : memref<32x544xbf16, #tpu.memory_space<vmem>>, vector<32x288xbf16>
      %c0_44 = arith.constant 0 : index
      %c0_45 = arith.constant 0 : index
      %54 = vector.load %arg18[%c0_44, %c0_45] : memref<288x288xbf16, #tpu.memory_space<vmem>>, vector<32x288xbf16>
      tpu.vector_store %arg18[%c0_44, %c0_45], %53 {strides = array<i32>} : memref<288x288xbf16, #tpu.memory_space<vmem>>, vector<32x288xbf16>,
      %c0_46 = arith.constant 0 : index
      %c110_47 = arith.constant 110 : index
      %55 = vector.load %arg17[%c0_46, %c110_47] : memref<32x544xbf16, #tpu.memory_space<vmem>>, vector<32x288xbf16>
      %c32_48 = arith.constant 32 : index
      %c0_49 = arith.constant 0 : index
      %56 = vector.load %arg18[%c32_48, %c0_49] : memref<288x288xbf16, #tpu.memory_space<vmem>>, vector<32x288xbf16>
      tpu.vector_store %arg18[%c32_48, %c0_49], %55 {strides = array<i32>} : memref<288x288xbf16, #tpu.memory_space<vmem>>, vector<32x288xbf16>,
      %c0_50 = arith.constant 0 : index
      %c111_51 = arith.constant 111 : index
      %57 = vector.load %arg17[%c0_50, %c111_51] : memref<32x544xbf16, #tpu.memory_space<vmem>>, vector<32x288xbf16>
      %c64_52 = arith.constant 64 : index
      %c0_53 = arith.constant 0 : index
      %58 = vector.load %arg18[%c64_52, %c0_53] : memref<288x288xbf16, #tpu.memory_space<vmem>>, vector<32x288xbf16>
      tpu.vector_store %arg18[%c64_52, %c0_53], %57 {strides = array<i32>} : memref<288x288xbf16, #tpu.memory_space<vmem>>, vector<32x288xbf16>,
      %c0_54 = arith.constant 0 : index
      %c127_55 = arith.constant 127 : index
      %59 = vector.load %arg17[%c0_54, %c127_55] : memref<32x544xbf16, #tpu.memory_space<vmem>>, vector<32x288xbf16>
      %c96_56 = arith.constant 96 : index
      %c0_57 = arith.constant 0 : index
      %60 = vector.load %arg18[%c96_56, %c0_57] : memref<288x288xbf16, #tpu.memory_space<vmem>>, vector<32x288xbf16>
      tpu.vector_store %arg18[%c96_56, %c0_57], %59 {strides = array<i32>} : memref<288x288xbf16, #tpu.memory_space<vmem>>, vector<32x288xbf16>,
      %c0_58 = arith.constant 0 : index
      %c128_59 = arith.constant 128 : index
      %61 = vector.load %arg17[%c0_58, %c128_59] : memref<32x544xbf16, #tpu.memory_space<vmem>>, vector<32x288xbf16>
      %c128_60 = arith.constant 128 : index
      %c0_61 = arith.constant 0 : index
      %62 = vector.load %arg18[%c128_60, %c0_61] : memref<288x288xbf16, #tpu.memory_space<vmem>>, vector<32x288xbf16>
      tpu.vector_store %arg18[%c128_60, %c0_61], %61 {strides = array<i32>} : memref<288x288xbf16, #tpu.memory_space<vmem>>, vector<32x288xbf16>,
      %c0_62 = arith.constant 0 : index
      %c129_63 = arith.constant 129 : index
      %63 = vector.load %arg17[%c0_62, %c129_63] : memref<32x544xbf16, #tpu.memory_space<vmem>>, vector<32x288xbf16>
      %c160_64 = arith.constant 160 : index
      %c0_65 = arith.constant 0 : index
      %64 = vector.load %arg18[%c160_64, %c0_65] : memref<288x288xbf16, #tpu.memory_space<vmem>>, vector<32x288xbf16>
      tpu.vector_store %arg18[%c160_64, %c0_65], %63 {strides = array<i32>} : memref<288x288xbf16, #tpu.memory_space<vmem>>, vector<32x288xbf16>,
      %c0_66 = arith.constant 0 : index
      %c145_67 = arith.constant 145 : index
      %65 = vector.load %arg17[%c0_66, %c145_67] : memref<32x544xbf16, #tpu.memory_space<vmem>>, vector<32x288xbf16>
      %c192_68 = arith.constant 192 : index
      %c0_69 = arith.constant 0 : index
      %66 = vector.load %arg18[%c192_68, %c0_69] : memref<288x288xbf16, #tpu.memory_space<vmem>>, vector<32x288xbf16>
      tpu.vector_store %arg18[%c192_68, %c0_69], %65 {strides = array<i32>} : memref<288x288xbf16, #tpu.memory_space<vmem>>, vector<32x288xbf16>,
      %c0_70 = arith.constant 0 : index
      %c146_71 = arith.constant 146 : index
      %67 = vector.load %arg17[%c0_70, %c146_71] : memref<32x544xbf16, #tpu.memory_space<vmem>>, vector<32x288xbf16>
      %c224_72 = arith.constant 224 : index
      %c0_73 = arith.constant 0 : index
      %68 = vector.load %arg18[%c224_72, %c0_73] : memref<288x288xbf16, #tpu.memory_space<vmem>>, vector<32x288xbf16>
      tpu.vector_store %arg18[%c224_72, %c0_73], %67 {strides = array<i32>} : memref<288x288xbf16, #tpu.memory_space<vmem>>, vector<32x288xbf16>,
      %c0_74 = arith.constant 0 : index
      %c147_75 = arith.constant 147 : index
      %69 = vector.load %arg17[%c0_74, %c147_75] : memref<32x544xbf16, #tpu.memory_space<vmem>>, vector<32x288xbf16>
      %c256_76 = arith.constant 256 : index
      %c0_77 = arith.constant 0 : index
      %70 = vector.load %arg18[%c256_76, %c0_77] : memref<288x288xbf16, #tpu.memory_space<vmem>>, vector<32x288xbf16>
      tpu.vector_store %arg18[%c256_76, %c0_77], %69 {strides = array<i32>} : memref<288x288xbf16, #tpu.memory_space<vmem>>, vector<32x288xbf16>,
      %c0_78 = arith.constant 0 : index
      %c0_79 = arith.constant 0 : index
      %71 = vector.load %arg18[%c0_78, %c0_79] : memref<288x288xbf16, #tpu.memory_space<vmem>>, vector<288x288xbf16>
      %cst_80 = arith.constant dense<0.000000e+00> : vector<32x288xf32>
      %72 = tpu.matmul %49, %71, %cst_80 {dimension_numbers = #tpu.dot_dimension_numbers<[1], [0], [0], [1], [0, 0, 1, 1], [], []>} : vector<32x288xbf16>, vector<288x288xbf16>, vector<32x288xf32> -> vector<32x288xf32>
      %73 = vector.broadcast %52 : vector<32x1xf32> to vector<32x288xf32>
      %74 = arith.addf %72, %73 : vector<32x288xf32>
      %75 = vector.broadcast %9 : vector<1x288xf32> to vector<32x288xf32>
      %76 = arith.mulf %74, %75 : vector<32x288xf32>
      %cst_81 = arith.constant dense<0.000000e+00> : vector<32xf32>
      %77 = vector.multi_reduction <add>, %76, %cst_81 [1] : vector<32x288xf32> to vector<32xf32>
      %78 = vector.shape_cast %77 : vector<32xf32> to vector<32x1xf32>
      %79 = arith.index_cast %arg1 : i32 to index
      %c0_82 = arith.constant 0 : index
      %c0_83 = arith.constant 0 : index
      %80 = vector.load %arg8[%79, %c0_82, %c0_83] : memref<2x32x8xf32, #tpu.memory_space<vmem>>, vector<1x32x8xf32>
      %81 = vector.shape_cast %80 : vector<1x32x8xf32> to vector<32x8xf32>
      %82 = vector.broadcast %78 : vector<32x1xf32> to vector<32x8xf32>
      %83 = arith.mulf %81, %82 : vector<32x8xf32>
      %cst_84 = arith.constant dense<0.000000e+00> : vector<8xf32>
      %84 = vector.multi_reduction <add>, %83, %cst_84 [0] : vector<32x8xf32> to vector<8xf32>
      %85 = vector.shape_cast %84 : vector<8xf32> to vector<1x8xf32>
      %86 = arith.index_cast %arg1 : i32 to index
      %c0_85 = arith.constant 0 : index
      %c0_86 = arith.constant 0 : index
      %87 = vector.load %arg9[%86, %c0_85, %c0_86] : memref<2x1x8xf32, #tpu.memory_space<vmem>>, vector<1x1x8xf32>
      %88 = vector.shape_cast %87 : vector<1x1x8xf32> to vector<1x8xf32>
      %89 = arith.addf %85, %88 : vector<1x8xf32>
      %cst_87 = arith.constant 0.000000e+00 : f32
      %90 = vector.broadcast %cst_87 : f32 to vector<1x8xf32>
      %91 = arith.maximumf %89, %90 : vector<1x8xf32>
      %92 = arith.index_cast %arg1 : i32 to index
      %c0_88 = arith.constant 0 : index
      %c0_89 = arith.constant 0 : index
      %93 = vector.load %arg10[%92, %c0_88, %c0_89] : memref<2x32x8xf32, #tpu.memory_space<vmem>>, vector<1x32x8xf32>
      %94 = vector.shape_cast %93 : vector<1x32x8xf32> to vector<32x8xf32>
      %95 = vector.broadcast %91 : vector<1x8xf32> to vector<32x8xf32>
      %96 = arith.mulf %94, %95 : vector<32x8xf32>
      %cst_90 = arith.constant dense<0.000000e+00> : vector<32xf32>
      %97 = vector.multi_reduction <add>, %96, %cst_90 [1] : vector<32x8xf32> to vector<32xf32>
      %98 = vector.shape_cast %97 : vector<32xf32> to vector<32x1xf32>
      %99 = arith.index_cast %arg1 : i32 to index
      %c0_91 = arith.constant 0 : index
      %c0_92 = arith.constant 0 : index
      %100 = vector.load %arg11[%99, %c0_91, %c0_92] : memref<2x32x1xf32, #tpu.memory_space<vmem>>, vector<1x32x1xf32>
      %101 = vector.shape_cast %100 : vector<1x32x1xf32> to vector<32x1xf32>
      %102 = arith.addf %98, %101 : vector<32x1xf32>
      %103 = arith.negf %102 : vector<32x1xf32>
      %104 = math.exp %103 : vector<32x1xf32>
      %cst_93 = arith.constant 1.000000e+00 : f32
      %105 = vector.broadcast %cst_93 : f32 to vector<32x1xf32>
      %106 = arith.addf %105, %104 : vector<32x1xf32>
      %107 = arith.divf %105, %106 : vector<32x1xf32>
      %c0_94 = arith.constant 0 : index
      %c128_95 = arith.constant 128 : index
      %108 = vector.load %arg15[%c0_94, %c128_95] : memref<32x544xf32, #tpu.memory_space<vmem>>, vector<32x288xf32>
      %cst_96 = arith.constant 0.699999988 : f32
      %109 = vector.broadcast %cst_96 : f32 to vector<32x1xf32>
      %110 = arith.mulf %107, %109 : vector<32x1xf32>
      %111 = vector.broadcast %110 : vector<32x1xf32> to vector<32x288xf32>
      %112 = arith.mulf %76, %111 : vector<32x288xf32>
      %113 = arith.addf %112, %108 : vector<32x288xf32>
      %c0_97 = arith.constant 0 : index
      %c128_98 = arith.constant 128 : index
      %114 = vector.load %arg15[%c0_97, %c128_98] : memref<32x544xf32, #tpu.memory_space<vmem>>, vector<32x288xf32>
      tpu.vector_store %arg15[%c0_97, %c128_98], %113 {strides = array<i32>} : memref<32x544xf32, #tpu.memory_space<vmem>>, vector<32x288xf32>,
    } else {
    }
    %c2_i32_2 = arith.constant 2 : i32
    %6 = arith.cmpi eq, %arg1, %c2_i32_2 : i32
    %7 = arith.extui %6 : i1 to i32
    %c0_i32_3 = arith.constant 0 : i32
    %8 = arith.cmpi ne, %7, %c0_i32_3 : i32
    scf.if %8 {
      %c0 = arith.constant 0 : index
      %c0_4 = arith.constant 0 : index
      %9 = vector.load %arg15[%c0, %c0_4] : memref<32x544xf32, #tpu.memory_space<vmem>>, vector<32x544xf32>
      %10 = arith.truncf %9 : vector<32x544xf32> to vector<32x544xbf16>
      %c0_5 = arith.constant 0 : index
      %c0_6 = arith.constant 0 : index
      %11 = vector.load %arg16[%c0_5, %c0_6] : memref<32x544xbf16, #tpu.memory_space<vmem>>, vector<32x544xbf16>
      tpu.vector_store %arg16[%c0_5, %c0_6], %10 {strides = array<i32>} : memref<32x544xbf16, #tpu.memory_space<vmem>>, vector<32x544xbf16>,
      %c0_7 = arith.constant 0 : index
      %c0_8 = arith.constant 0 : index
      %12 = vector.load %arg12[%c0_7, %c0_8] : memref<32x288xbf16, #tpu.memory_space<vmem>>, vector<32x288xbf16>
      %c0_9 = arith.constant 0 : index
      %c0_10 = arith.constant 0 : index
      %13 = vector.load %arg13[%c0_9, %c0_10] : memref<32x1xf32, #tpu.memory_space<vmem>>, vector<32x1xf32>
      %c0_11 = arith.constant 0 : index
      %c109 = arith.constant 109 : index
      %14 = vector.load %arg16[%c0_11, %c109] : memref<32x544xbf16, #tpu.memory_space<vmem>>, vector<32x288xbf16>
      %c0_12 = arith.constant 0 : index
      %c0_13 = arith.constant 0 : index
      %15 = vector.load %arg18[%c0_12, %c0_13] : memref<288x288xbf16, #tpu.memory_space<vmem>>, vector<32x288xbf16>
      tpu.vector_store %arg18[%c0_12, %c0_13], %14 {strides = array<i32>} : memref<288x288xbf16, #tpu.memory_space<vmem>>, vector<32x288xbf16>,
      %c0_14 = arith.constant 0 : index
      %c110 = arith.constant 110 : index
      %16 = vector.load %arg16[%c0_14, %c110] : memref<32x544xbf16, #tpu.memory_space<vmem>>, vector<32x288xbf16>
      %c32 = arith.constant 32 : index
      %c0_15 = arith.constant 0 : index
      %17 = vector.load %arg18[%c32, %c0_15] : memref<288x288xbf16, #tpu.memory_space<vmem>>, vector<32x288xbf16>
      tpu.vector_store %arg18[%c32, %c0_15], %16 {strides = array<i32>} : memref<288x288xbf16, #tpu.memory_space<vmem>>, vector<32x288xbf16>,
      %c0_16 = arith.constant 0 : index
      %c111 = arith.constant 111 : index
      %18 = vector.load %arg16[%c0_16, %c111] : memref<32x544xbf16, #tpu.memory_space<vmem>>, vector<32x288xbf16>
      %c64 = arith.constant 64 : index
      %c0_17 = arith.constant 0 : index
      %19 = vector.load %arg18[%c64, %c0_17] : memref<288x288xbf16, #tpu.memory_space<vmem>>, vector<32x288xbf16>
      tpu.vector_store %arg18[%c64, %c0_17], %18 {strides = array<i32>} : memref<288x288xbf16, #tpu.memory_space<vmem>>, vector<32x288xbf16>,
      %c0_18 = arith.constant 0 : index
      %c127 = arith.constant 127 : index
      %20 = vector.load %arg16[%c0_18, %c127] : memref<32x544xbf16, #tpu.memory_space<vmem>>, vector<32x288xbf16>
      %c96 = arith.constant 96 : index
      %c0_19 = arith.constant 0 : index
      %21 = vector.load %arg18[%c96, %c0_19] : memref<288x288xbf16, #tpu.memory_space<vmem>>, vector<32x288xbf16>
      tpu.vector_store %arg18[%c96, %c0_19], %20 {strides = array<i32>} : memref<288x288xbf16, #tpu.memory_space<vmem>>, vector<32x288xbf16>,
      %c0_20 = arith.constant 0 : index
      %c128 = arith.constant 128 : index
      %22 = vector.load %arg16[%c0_20, %c128] : memref<32x544xbf16, #tpu.memory_space<vmem>>, vector<32x288xbf16>
      %c128_21 = arith.constant 128 : index
      %c0_22 = arith.constant 0 : index
      %23 = vector.load %arg18[%c128_21, %c0_22] : memref<288x288xbf16, #tpu.memory_space<vmem>>, vector<32x288xbf16>
      tpu.vector_store %arg18[%c128_21, %c0_22], %22 {strides = array<i32>} : memref<288x288xbf16, #tpu.memory_space<vmem>>, vector<32x288xbf16>,
      %c0_23 = arith.constant 0 : index
      %c129 = arith.constant 129 : index
      %24 = vector.load %arg16[%c0_23, %c129] : memref<32x544xbf16, #tpu.memory_space<vmem>>, vector<32x288xbf16>
      %c160 = arith.constant 160 : index
      %c0_24 = arith.constant 0 : index
      %25 = vector.load %arg18[%c160, %c0_24] : memref<288x288xbf16, #tpu.memory_space<vmem>>, vector<32x288xbf16>
      tpu.vector_store %arg18[%c160, %c0_24], %24 {strides = array<i32>} : memref<288x288xbf16, #tpu.memory_space<vmem>>, vector<32x288xbf16>,
      %c0_25 = arith.constant 0 : index
      %c145 = arith.constant 145 : index
      %26 = vector.load %arg16[%c0_25, %c145] : memref<32x544xbf16, #tpu.memory_space<vmem>>, vector<32x288xbf16>
      %c192 = arith.constant 192 : index
      %c0_26 = arith.constant 0 : index
      %27 = vector.load %arg18[%c192, %c0_26] : memref<288x288xbf16, #tpu.memory_space<vmem>>, vector<32x288xbf16>
      tpu.vector_store %arg18[%c192, %c0_26], %26 {strides = array<i32>} : memref<288x288xbf16, #tpu.memory_space<vmem>>, vector<32x288xbf16>,
      %c0_27 = arith.constant 0 : index
      %c146 = arith.constant 146 : index
      %28 = vector.load %arg16[%c0_27, %c146] : memref<32x544xbf16, #tpu.memory_space<vmem>>, vector<32x288xbf16>
      %c224 = arith.constant 224 : index
      %c0_28 = arith.constant 0 : index
      %29 = vector.load %arg18[%c224, %c0_28] : memref<288x288xbf16, #tpu.memory_space<vmem>>, vector<32x288xbf16>
      tpu.vector_store %arg18[%c224, %c0_28], %28 {strides = array<i32>} : memref<288x288xbf16, #tpu.memory_space<vmem>>, vector<32x288xbf16>,
      %c0_29 = arith.constant 0 : index
      %c147 = arith.constant 147 : index
      %30 = vector.load %arg16[%c0_29, %c147] : memref<32x544xbf16, #tpu.memory_space<vmem>>, vector<32x288xbf16>
      %c256 = arith.constant 256 : index
      %c0_30 = arith.constant 0 : index
      %31 = vector.load %arg18[%c256, %c0_30] : memref<288x288xbf16, #tpu.memory_space<vmem>>, vector<32x288xbf16>
      tpu.vector_store %arg18[%c256, %c0_30], %30 {strides = array<i32>} : memref<288x288xbf16, #tpu.memory_space<vmem>>, vector<32x288xbf16>,
      %c0_31 = arith.constant 0 : index
      %c0_32 = arith.constant 0 : index
      %32 = vector.load %arg18[%c0_31, %c0_32] : memref<288x288xbf16, #tpu.memory_space<vmem>>, vector<288x288xbf16>
      %cst = arith.constant dense<0.000000e+00> : vector<32x288xf32>
      %33 = tpu.matmul %12, %32, %cst {dimension_numbers = #tpu.dot_dimension_numbers<[1], [0], [0], [1], [0, 0, 1, 1], [], []>} : vector<32x288xbf16>, vector<288x288xbf16>, vector<32x288xf32> -> vector<32x288xf32>
      %34 = vector.broadcast %13 : vector<32x1xf32> to vector<32x288xf32>
      %35 = arith.addf %33, %34 : vector<32x288xf32>
      %c0_33 = arith.constant 0 : index
      %c0_34 = arith.constant 0 : index
      %c0_35 = arith.constant 0 : index
      %36 = vector.load %arg3[%c0_33, %c0_34, %c0_35] : memref<1x32x288xf32, #tpu.memory_space<vmem>>, vector<1x32x288xf32>
      %37 = vector.shape_cast %36 : vector<1x32x288xf32> to vector<32x288xf32>
      %38 = arith.addf %35, %37 : vector<32x288xf32>
      %c0_36 = arith.constant 0 : index
      %c0_37 = arith.constant 0 : index
      %c0_38 = arith.constant 0 : index
      %39 = vector.load %arg14[%c0_36, %c0_37, %c0_38] : memref<1x32x288xf32, #tpu.memory_space<vmem>>, vector<1x32x288xf32>
      %40 = vector.shape_cast %39 : vector<1x32x288xf32> to vector<32x288xf32>
      %41 = vector.shape_cast %38 : vector<32x288xf32> to vector<1x32x288xf32>
      tpu.vector_store %arg14[%c0_36, %c0_37, %c0_38], %41 {strides = array<i32>} : memref<1x32x288xf32, #tpu.memory_space<vmem>>, vector<1x32x288xf32>,
    } else {
    }
    return
  }
  func.func @transform_0(%arg0: i32, %arg1: i32) -> (i32, i32) {
    %c0_i32 = arith.constant 0 : i32
    %c0_i32_0 = arith.constant 0 : i32
    %c0_i32_1 = arith.constant 0 : i32
    return %c0_i32, %c0_i32_0 : i32, i32
  }
  func.func @transform_1(%arg0: i32, %arg1: i32) -> (i32, i32, i32) {
    %c0_i32 = arith.constant 0 : i32
    %c0_i32_0 = arith.constant 0 : i32
    %c0_i32_1 = arith.constant 0 : i32
    return %arg0, %c0_i32, %c0_i32_0 : i32, i32, i32
  }
  func.func @transform_2(%arg0: i32, %arg1: i32) -> (i32, i32, i32) {
    %c0_i32 = arith.constant 0 : i32
    %c0_i32_0 = arith.constant 0 : i32
    %c0_i32_1 = arith.constant 0 : i32
    %c0_i32_2 = arith.constant 0 : i32
    return %c0_i32, %c0_i32_0, %c0_i32_1 : i32, i32, i32
  }
  func.func @transform_3(%arg0: i32, %arg1: i32) -> (i32, i32, i32) {
    %c0_i32 = arith.constant 0 : i32
    %c0_i32_0 = arith.constant 0 : i32
    %c0_i32_1 = arith.constant 0 : i32
    %c0_i32_2 = arith.constant 0 : i32
    return %c0_i32, %c0_i32_0, %c0_i32_1 : i32, i32, i32
  }
  func.func @transform_4(%arg0: i32, %arg1: i32) -> (i32, i32, i32) {
    %c0_i32 = arith.constant 0 : i32
    %c0_i32_0 = arith.constant 0 : i32
    %c0_i32_1 = arith.constant 0 : i32
    %c0_i32_2 = arith.constant 0 : i32
    return %c0_i32, %c0_i32_0, %c0_i32_1 : i32, i32, i32
  }
  func.func @transform_5(%arg0: i32, %arg1: i32) -> (i32, i32, i32) {
    %c0_i32 = arith.constant 0 : i32
    %c0_i32_0 = arith.constant 0 : i32
    %c0_i32_1 = arith.constant 0 : i32
    %c0_i32_2 = arith.constant 0 : i32
    return %c0_i32, %c0_i32_0, %c0_i32_1 : i32, i32, i32
  }
  func.func @transform_6(%arg0: i32, %arg1: i32) -> (i32, i32, i32) {
    %c0_i32 = arith.constant 0 : i32
    %c0_i32_0 = arith.constant 0 : i32
    %c0_i32_1 = arith.constant 0 : i32
    %c0_i32_2 = arith.constant 0 : i32
    return %c0_i32, %c0_i32_0, %c0_i32_1 : i32, i32, i32
  }
  func.func @transform_7(%arg0: i32, %arg1: i32) -> (i32, i32, i32) {
    %c0_i32 = arith.constant 0 : i32
    %c0_i32_0 = arith.constant 0 : i32
    %c0_i32_1 = arith.constant 0 : i32
    %c0_i32_2 = arith.constant 0 : i32
    return %c0_i32, %c0_i32_0, %c0_i32_1 : i32, i32, i32
  }
  func.func @transform_8(%arg0: i32, %arg1: i32) -> (i32, i32, i32) {
    %c0_i32 = arith.constant 0 : i32
    %c0_i32_0 = arith.constant 0 : i32
    %c0_i32_1 = arith.constant 0 : i32
    %c0_i32_2 = arith.constant 0 : i32
    return %c0_i32, %c0_i32_0, %c0_i32_1 : i32, i32, i32
  }
  func.func @transform_9(%arg0: i32, %arg1: i32) -> (i32, i32, i32) {
    %c0_i32 = arith.constant 0 : i32
    %c0_i32_0 = arith.constant 0 : i32
    %c0_i32_1 = arith.constant 0 : i32
    %c0_i32_2 = arith.constant 0 : i32
    return %c0_i32, %c0_i32_0, %c0_i32_1 : i32, i32, i32
  }
  func.func @transform_10(%arg0: i32, %arg1: i32) -> (i32, i32) {
    %c0_i32 = arith.constant 0 : i32
    %c0_i32_0 = arith.constant 0 : i32
    %c0_i32_1 = arith.constant 0 : i32
    return %c0_i32, %c0_i32_0 : i32, i32
  }
  func.func @transform_11(%arg0: i32, %arg1: i32) -> (i32, i32) {
    %c0_i32 = arith.constant 0 : i32
    %c0_i32_0 = arith.constant 0 : i32
    %c0_i32_1 = arith.constant 0 : i32
    return %c0_i32, %c0_i32_0 : i32, i32
  }
  func.func @transform_12(%arg0: i32, %arg1: i32) -> (i32, i32, i32) {
    %c0_i32 = arith.constant 0 : i32
    %c0_i32_0 = arith.constant 0 : i32
    %c0_i32_1 = arith.constant 0 : i32
    return %arg0, %c0_i32, %c0_i32_0 : i32, i32, i32
  }
}

</mosaic_0001>

<bundles_post_ra>
// kernel: residual_group_forward.1
= control target key start
LH: loop header
LB: loop body
LE: loop exit
PB: predicated region body
PF: predicated region fallthrough
CT: control target
= control target key end

     0   :  { %s3491_s21 = smov 0   ;;  %s3493_s22 = smov 0   ;;  %s4513_s0 = inlined_call_operand.vmem [shape: f32[1,288], index: 0, kind: input, shape index: {}]   ;;  %s4514_s1 = inlined_call_operand.vmem [shape: f32[2,32,288], index: 1, kind: input, shape index: {}]   ;;  %s4515_s2 = inlined_call_operand.vmem [shape: bf16[2,32,288], index: 2, kind: input, shape index: {}]   ;;  %s4516_s3 = inlined_call_operand.vmem [shape: f32[2,32,1], index: 3, kind: input, shape index: {}]   ;;  %s4517_s4 = inlined_call_operand.vmem [shape: bf16[2,32,288], index: 4, kind: input, shape index: {}]   ;;  %s4518_s5 = inlined_call_operand.vmem [shape: f32[2,32,1], index: 5, kind: input, shape index: {}]   ;;  %s4519_s6 = inlined_call_operand.vmem [shape: f32[2,32,8], index: 6, kind: input, shape index: {}]   ;;  %s4520_s7 = inlined_call_operand.vmem [shape: f32[2,1,8], index: 7, kind: input, shape index: {}]   ;;  %s4521_s8 = inlined_call_operand.vmem [shape: f32[2,32,8], index: 8, kind: input, shape index: {}]   ;;  %s4522_s9 = inlined_call_operand.vmem [shape: f32[2,32,1], index: 9, kind: input, shape index: {}]   ;;  %s4523_s10 = inlined_call_operand.vmem [shape: bf16[32,288], index: 10, kind: input, shape index: {}]   ;;  %s4524_s11 = inlined_call_operand.vmem [shape: f32[32,1], index: 11, kind: input, shape index: {}]   ;;  %s4525_s12 = inlined_call_operand.vmem [shape: f32[2,32,288], index: 12, kind: output, shape index: {}]  }
   0x1   :  { %4538 = sst [smem:[#allocation6_spill]] %s4513_s0  ;;  %s3495_s23 = smov 0  }
   0x2   :  { %s3497_s24 = smov 0   ;;  %s3499_s25 = smov 0  }
   0x3 LB: > { %s31_s26 = sadd.s32 1, %s3396_s23  ;;  %s34_s27 = sadd.s32 1, %s3400_s24  ;;  %s3404_s25 = sphi %s3499_s25, %s22_s25   ;;  %s3400_s24 = sphi %s3497_s24, %s4550_s24   ;;  %s3396_s23 = sphi %s3495_s23, %s4549_s23   ;;  %s3392_s22 = sphi %s3493_s22, %s4548_s22   ;;  %s3388_s21 = sphi %s3491_s21, %s4547_s21  }
   0x4   : > { %p32_p0 = scmp.ge.s32.totalorder %s31_s26, 3  ;;  %p3046_p1 = scmp.ge.s32.totalorder %s3404_s25, 1 }
   0x5   : > { %p374_p2 = scmp.lt.s32.totalorder %s3404_s25, 7 }
   0x6   : > { %s4552_s26 = smov (%p32_p0, %s31_s26), 0  ;;  %s4554_s27 = smov (!%p32_p0, %s34_s27), %s3400_s24 }
   0x7   : > { %p375_p3 = pnand %p3046_p1, %p374_p2  ;;  %p36_p4 = scmp.ge.s32.totalorder %s4554_s27, 2 }
   0x8   : > { %p416_p5 = scmp.lt.s32.totalorder (!%p375_p3), %s3392_s22, 1  ;;  %p3049_p6 = scmp.ne.s32.totalorder (!%p375_p3), %s3388_s21, 0 }
   0x9   : > { %s4556_s27 = smov (%p36_p4, %s4554_s27), 0  ;;  %378 = sbr.rel (%p375_p3) target bundleno = 1935 (0x78f), region = 68 }
  0x10   : > { %s4558_s22 = smov (!%p416_p5, %s3392_s22), 1  ;;  %430 = sbr.rel (%p3049_p6) target bundleno = 32 (0x20), region = 72 }
  0x11   : > { %s3261_s28 = smul.u32 96, %s4558_s22  ;;  %vm435_vm0 = vcmask (!%p3049_p6), 1047808   ;;  %vm437_vm1 = vcmask (!%p3049_p6), 261120   ;;  %v3406_v2 = vmov (!%p3049_p6), 0.0   ;;  %v3407_v3 = vmov (!%p3049_p6), 0  }
  0x12   : > { %436 = vst.msk [vmem:[#allocation2 + $0x18] sm:$0xff] (!%p3049_p6), %vm435_vm0, %v3406_v2  ;;  %431 = vst [vmem:[#allocation2] sm:$0xff] (!%p3049_p6), %v3406_v2 }
  0x13   : > { %s3526_s13 = scalar_lea.vmem %s4514_s1, %s3261_s28  ;;  %s3531_s16 = scalar_lea.vmem %s4525_s12, %s3261_s28  ;;  %432 = vst [vmem:[#allocation2 + $0x28] sm:$0xff] (!%p3049_p6), %v3406_v2  ;;  %433 = vst [vmem:[#allocation2 + $0x50] sm:$0xff] (!%p3049_p6), %v3406_v2 }
  0x14   : > { %v451_v0 = vld [vmem:[%s3526_s13] sm:$0xff] (!%p3049_p6)  ;;  %v452_v1 = vld [vmem:[%s3526_s13 + $0x8] sm:$0xff] (!%p3049_p6)  ;;  %434 = vst [vmem:[#allocation2 + $0x78] sm:$0xff] (!%p3049_p6), %v3406_v2  ;;  %439 = vst.msk [vmem:[#allocation2 + $0x40] sm:$0xff] (!%p3049_p6), %vm435_vm0, %v3406_v2 }
  0x15   : > { %441 = vst.msk [vmem:[#allocation2 + $0x68] sm:$0xff] (!%p3049_p6), %vm435_vm0, %v3406_v2  ;;  %443 = vst.msk [vmem:[#allocation2 + $0x90] sm:$0xff] (!%p3049_p6), %vm435_vm0, %v3406_v2  ;;  %v453_v4 = vld [vmem:[%s3526_s13 + $0x10] sm:$0xff] (!%p3049_p6)  ;;  %v454_v5 = vld [vmem:[%s3526_s13 + $0x18] sm:$0xff] (!%p3049_p6) }
  0x16   : > { %438 = vst.msk [vmem:[#allocation2 + $0x20] sm:$0xff] (!%p3049_p6), %vm437_vm1, %v3406_v2  ;;  %440 = vst.msk [vmem:[#allocation2 + $0x48] sm:$0xff] (!%p3049_p6), %vm437_vm1, %v3406_v2  ;;  %v455_v6 = vld [vmem:[%s3526_s13 + $0x20] sm:$0xff] (!%p3049_p6)  ;;  %v456_v7 = vld [vmem:[%s3526_s13 + $0x28] sm:$0xff] (!%p3049_p6) }
  0x17   : > { %442 = vst.msk [vmem:[#allocation2 + $0x70] sm:$0xff] %vm437_vm1, %v3406_v2  ;;  %444 = vst.msk [vmem:[#allocation2 + $0x98] sm:$0xff] %vm437_vm1, %v3406_v2  ;;  %v457_v8 = vld [vmem:[%s3526_s13 + $0x30] sm:$0xff]  ;;  %v458_v9 = vld [vmem:[%s3526_s13 + $0x38] sm:$0xff] }
  0x18   : > { %445 = vst [vmem:[#allocation4] sm:$0xff] %v3407_v3  ;;  %446 = vst [vmem:[#allocation4 + $0x28] sm:$0xff] %v3407_v3  ;;  %v459_v10 = vld [vmem:[%s3526_s13 + $0x40] sm:$0xff]  ;;  %v460_v11 = vld [vmem:[%s3526_s13 + $0x48] sm:$0xff] }
  0x19   : > { %447 = vst.msk [vmem:[#allocation4 + $0x18] sm:$0xff] %vm435_vm0, %v3407_v3  ;;  %449 = vst.msk [vmem:[#allocation4 + $0x40] sm:$0xff] %vm435_vm0, %v3407_v3  ;;  %v461_v12 = vld [vmem:[%s3526_s13 + $0x50] sm:$0xff]  ;;  %v462_v13 = vld [vmem:[%s3526_s13 + $0x58] sm:$0xff] }
  0x1a   : > { %463 = vst [vmem:[#allocation2 + $0x8] sm:$0xff] %v451_v0  ;;  %464 = vst [vmem:[#allocation2 + $0x10] sm:$0xff] %v452_v1 }
  0x1b   : > { %465 = vst.msk [vmem:[#allocation2 + $0x18] sm:$0xff] %vm437_vm1, %v453_v4  ;;  %466 = vst [vmem:[#allocation2 + $0x30] sm:$0xff] %v454_v5 }
  0x1c   : > { %467 = vst [vmem:[#allocation2 + $0x38] sm:$0xff] %v455_v6  ;;  %468 = vst.msk [vmem:[#allocation2 + $0x40] sm:$0xff] %vm437_vm1, %v456_v7 }
  0x1d   : > { %469 = vst [vmem:[#allocation2 + $0x58] sm:$0xff] %v457_v8  ;;  %470 = vst [vmem:[#allocation2 + $0x60] sm:$0xff] %v458_v9 }
  0x1e   : > { %471 = vst.msk [vmem:[#allocation2 + $0x68] sm:$0xff] %vm437_vm1, %v459_v10  ;;  %472 = vst [vmem:[#allocation2 + $0x80] sm:$0xff] %v460_v11 }
  0x1f   : > { %473 = vst [vmem:[#allocation2 + $0x88] sm:$0xff] %v461_v12  ;;  %474 = vst.msk [vmem:[#allocation2 + $0x90] sm:$0xff] %vm437_vm1, %v462_v13 }
  0x20 PF: > { %p3050_p7 = scmp.ge.s32.totalorder %s3388_s21, 2 }
  0x21   : > { %v481_v14 = vld [vmem:[#allocation2 + $0x8] sm:$0xff] (!%p3050_p7)  ;;  %v482_v19 = vld [vmem:[#allocation2 + $0x10] sm:$0xff] (!%p3050_p7)  ;;  %s3408_s17 = smov (!%p3050_p7), 19   ;;  %s3409_s18 = smov (!%p3050_p7), 18   ;;  %vm514_vm2 = vcmask (!%p3050_p7), 261120   ;;  %v3416_v40 = vmov (!%p3050_p7), 0  }
  0x22   : > { %478 = sbr.rel (%p3050_p7) target bundleno = 1467 (0x5bb), region = 76  ;;  %v486_v15 = vld [vmem:[#allocation2 + $0x30] sm:$0xff] (!%p3050_p7)  ;;  %v480_v16 = vld [vmem:[#allocation2] sm:$0xff] (!%p3050_p7)  ;;  %v483_v32 = vld [vmem:[#allocation2 + $0x18] sm:$0xff] (!%p3050_p7)  ;;  %s4535_s19 = smov (!%p3050_p7), 17   ;;  %3323 = vset.pattern.permute.xlu1 (!%p3050_p7), %v3416_v40  ;;  %3322 = vset.pattern.permute.xlu0 (!%p3050_p7), %v3416_v40  ;;  %vm570_vm3 = vcmask (!%p3050_p7), 154624  }
  0x23   : > { %v3561_v17 = vpack.c.bf16 (!%p3050_p7), %v486_v15, %v481_v14  ;;  %v485_v18 = vld [vmem:[#allocation2 + $0x28] sm:$0xff] (!%p3050_p7)  ;;  %v487_v20 = vld [vmem:[#allocation2 + $0x38] sm:$0xff] (!%p3050_p7)  ;;  %v490_v28 = vld [vmem:[#allocation2 + $0x50] sm:$0xff] (!%p3050_p7)  ;;  %s4537_s20 = smov (!%p3050_p7), 1   ;;  %s4526_s22 = smov (!%p3050_p7), 127   ;;  %vm621_vm4 = vcmask (!%p3050_p7), 146432  }
  0x24   : > { %v500_v21 = vpack.c.bf16 (!%p3050_p7), %v485_v18, %v480_v16  ;;  %v3563_v22 = vpack.c.bf16 (!%p3050_p7), %v487_v20, %v482_v19  ;;  %v491_v23 = vld [vmem:[#allocation2 + $0x58] sm:$0xff] (!%p3050_p7)  ;;  %v492_v25 = vld [vmem:[#allocation2 + $0x60] sm:$0xff] (!%p3050_p7)  ;;  %s4533_s28 = smov (!%p3050_p7), 111   ;;  %s4528_s29 = smul.u32 (!%p3050_p7), 48, %s3388_s21  ;;  %vm672_vm5 = vcmask (!%p3050_p7), 138240   ;;  %vm723_vm6 = vcmask (!%p3050_p7), 7168  }
  0x25   : > { %v496_v24 = vld [vmem:[#allocation2 + $0x80] sm:$0xff] (!%p3050_p7)  ;;  %556 = vrot.lane.b32.xlu0 (!%p3050_p7), %v3561_v17, %s3408_s17  ;;  %v495_v29 = vld [vmem:[#allocation2 + $0x78] sm:$0xff] (!%p3050_p7)  ;;  %v493_v34 = vld [vmem:[#allocation2 + $0x68] sm:$0xff] (!%p3050_p7)  ;;  %s4529_s30 = smov (!%p3050_p7), 109   ;;  %s3713_s14 = sshll.u32 (!%p3050_p7), %s3388_s21, 5  ;;  %vm778_vm7 = vcmask (!%p3050_p7), 1039360  }
  0x26   : > { %v3567_v26 = vpack.c.bf16 (!%p3050_p7), %v496_v24, %v491_v23  ;;  %v497_v27 = vld [vmem:[#allocation2 + $0x88] sm:$0xff] (!%p3050_p7)  ;;  %554 = vrot.lane.b32.xlu1 (!%p3050_p7), %v500_v21, %s3408_s17  ;;  %v505_v31 = vpack.c.bf16 (!%p3050_p7), %v495_v29, %v490_v28  ;;  %v488_v33 = vld [vmem:[#allocation2 + $0x40] sm:$0xff] (!%p3050_p7)  ;;  %v498_v36 = vld [vmem:[#allocation2 + $0x90] sm:$0xff] (!%p3050_p7)  ;;  %s3647_s15 = scalar_lea.vmem (!%p3050_p7), %s4515_s2, %s4528_s29  ;;  %vm819_vm8 = vcmask (!%p3050_p7), 908288   ;;  %vm860_vm9 = vcmask (!%p3050_p7), 900096   ;;  %s4539_s0 = sld [smem:[#allocation6_spill]] (!%p3050_p7) }
  0x27   : > { %v3570_v30 = vpack.c.bf16 (!%p3050_p7), %v497_v27, %v492_v25  ;;  %v3572_v35 = vpack.c.bf16 (!%p3050_p7), %v488_v33, %v483_v32  ;;  %v3574_v37 = vpack.c.bf16 (!%p3050_p7), %v498_v36, %v493_v34  ;;  %v3326_v38 = vld [vmem:[%s3647_s15 + $0x4] ss:$12 sps:$4 sm:$0xff] (!%p3050_p7)   ;;  %vm901_vm10 = vcmask (!%p3050_p7), 891904   ;;  %s2044_s29 = scalar_lea.vmem (!%p3050_p7), %s4521_s8, %s3713_s14 }
  0x28   : > { %1060 = vmatprep.mubr.bf16.mxu0 (!%p3050_p7), %v3326_v38  ;;  %1166 = vmatprep.mubr.bf16.mxu1 (!%p3050_p7), %v3326_v38  ;;  %vm2026_vm11 = vcmask (!%p3050_p7), 64512  }
  0x29   : > { %558 = vrot.lane.b32.xlu0 %v3563_v22, %s3408_s17  ;;  %750 = vst.msk [vmem:[#allocation5 + $0xd0] sm:$0xff] %vm514_vm2, %v3572_v35  ;;  %753 = vst.msk [vmem:[#allocation5 + $0xe8] sm:$0xff] %vm514_vm2, %v3574_v37 }
  0x2a   : > { %564 = vrot.lane.b32.xlu1 %v3567_v26, %s3408_s17 }
  0x2d   : > { %566 = vrot.lane.b32.xlu0 %v3570_v30, %s3408_s17 }
  0x2e   : > { %562 = vrot.lane.b32.xlu1 %v505_v31, %s3408_s17 }
  0x30   : > { %v944_v39 = vld [vmem:[#allocation5 + $0xd0] sm:$0xff] }
  0x31   : > { %607 = vrot.lane.b32.xlu0 %v3561_v17, %s3409_s18  ;;  %3093 = vmatprep.subr.bf16.mxu1 %v944_v39 }
  0x32   : > { %609 = vrot.lane.b32.xlu1 %v3563_v22, %s3409_s18 }
  0x35   : > { %605 = vrot.lane.b32.xlu0 %v500_v21, %s3409_s18 }
  0x36   : > { %615 = vrot.lane.b32.xlu1 %v3567_v26, %s3409_s18 }
  0x39   : > { %617 = vrot.lane.b32.xlu0 %v3570_v30, %s3409_s18 }
  0x3a   : > { %613 = vrot.lane.b32.xlu1 %v505_v31, %s3409_s18 }
  0x3d   : > { %658 = vrot.lane.b32.xlu0 %v3561_v17, %s4535_s19 }
  0x3e   : > { %660 = vrot.lane.b32.xlu1 %v3563_v22, %s4535_s19 }
  0x41   : > { %656 = vrot.lane.b32.xlu0 %v500_v21, %s4535_s19 }
  0x42   : > { %666 = vrot.lane.b32.xlu1 %v3567_v26, %s4535_s19 }
  0x45   : > { %668 = vrot.lane.b32.xlu0 %v3570_v30, %s4535_s19 }
  0x46   : > { %664 = vrot.lane.b32.xlu1 %v505_v31, %s4535_s19 }
  0x49   : > { %709 = vrot.lane.b32.xlu0 %v3561_v17, %s4537_s20 }
  0x4a   : > { %711 = vrot.lane.b32.xlu1 %v3563_v22, %s4537_s20 }
  0x4d   : > { %707 = vrot.lane.b32.xlu0 %v500_v21, %s4537_s20 }
  0x4e   : > { %717 = vrot.lane.b32.xlu1 %v3567_v26, %s4537_s20 }
  0x51   : > { %719 = vrot.lane.b32.xlu0 %v3570_v30, %s4537_s20 }
  0x52   : > { %715 = vrot.lane.b32.xlu1 %v505_v31, %s4537_s20 }
  0x55   : > { %768 = vrot.lane.b32.xlu0 %v3563_v22, %s4526_s22 }
  0x56   : > { %770 = vrot.lane.b32.xlu1 %v3572_v35, %s4526_s22 }
  0x59   : > { %766 = vrot.lane.b32.xlu0 %v3561_v17, %s4526_s22 }
  0x5a   : > { %774 = vrot.lane.b32.xlu1 %v3570_v30, %s4526_s22 }
  0x5d   : > { %776 = vrot.lane.b32.xlu0 %v3574_v37, %s4526_s22 }
  0x5e   : > { %772 = vrot.lane.b32.xlu1 %v3567_v26, %s4526_s22  ;;  %s4531_s22 = smov 110  }
  0x61   : > { %809 = vrot.lane.b32.xlu0 %v3563_v22, %s4533_s28 }
  0x62   : > { %811 = vrot.lane.b32.xlu1 %v3572_v35, %s4533_s28 }
  0x65   : > { %807 = vrot.lane.b32.xlu0 %v3561_v17, %s4533_s28 }
  0x66   : > { %815 = vrot.lane.b32.xlu1 %v3570_v30, %s4533_s28 }
  0x69   : > { %817 = vrot.lane.b32.xlu0 %v3574_v37, %s4533_s28 }
  0x6a   : > { %813 = vrot.lane.b32.xlu1 %v3567_v26, %s4533_s28 }
  0x6d   : > { %850 = vrot.lane.b32.xlu0 %v3563_v22, %s4531_s22 }
  0x6e   : > { %852 = vrot.lane.b32.xlu1 %v3572_v35, %s4531_s22 }
  0x71   : > { %848 = vrot.lane.b32.xlu0 %v3561_v17, %s4531_s22 }
  0x72   : > { %856 = vrot.lane.b32.xlu1 %v3570_v30, %s4531_s22 }
  0x75   : > { %858 = vrot.lane.b32.xlu0 %v3574_v37, %s4531_s22 }
  0x76   : > { %854 = vrot.lane.b32.xlu1 %v3567_v26, %s4531_s22  ;;  %s533_s22 = scalar_lea.vmem %s4516_s3, %s3713_s14 }
  0x77   : > { %v534_v62 = vld [vmem:[%s533_s22] sm:$0xff]  ;;  %v535_v63 = vld [vmem:[%s533_s22 + $0x8] sm:$0xff]  ;;  %v537_v2 = vld [vmem:[%s533_s22 + $0x18] sm:$0xff] }
  0x78   : > { %v536_v3 = vld [vmem:[%s533_s22 + $0x10] sm:$0xff]  ;;  %s4542_s22 = smov 109  }
  0x79   : > { %891 = vrot.lane.b32.xlu0 %v3563_v22, %s4529_s30 }
  0x7a   : > { %893 = vrot.lane.b32.xlu1 %v3572_v35, %s4529_s30 }
  0x7d   : > { %889 = vrot.lane.b32.xlu0 %v3561_v17, %s4529_s30 }
  0x7e   : > { %560 = vrot.lane.b32.xlu1 %v3572_v35, %s3408_s17 }
  0x81   : > { %897 = vrot.lane.b32.xlu0 %v3570_v30, %s4529_s30 }
  0x82   : > { %899 = vrot.lane.b32.xlu1 %v3574_v37, %s4529_s30 }
  0x85   : > { %895 = vrot.lane.b32.xlu0 %v3567_v26, %s4529_s30  ;;  %s4541_s30 = smov 110  }
  0x86   : > { %568 = vrot.lane.b32.xlu1 %v3574_v37, %s3408_s17 }
  0x89   : > { %611 = vrot.lane.b32.xlu0 %v3572_v35, %s3409_s18 }
  0x8a   : > { %619 = vrot.lane.b32.xlu1 %v3574_v37, %s3409_s18 }
  0x8d   : > { %662 = vrot.lane.b32.xlu0 %v3572_v35, %s4535_s19 }
  0x8e   : > { %670 = vrot.lane.b32.xlu1 %v3574_v37, %s4535_s19 }
  0x91   : > { %713 = vrot.lane.b32.xlu0 %v3572_v35, %s4537_s20 }
  0x92   : > { %721 = vrot.lane.b32.xlu1 %v3574_v37, %s4537_s20 }
  0x95   : > { %974 = vperm.xlu0 %3322, %v534_v62  }
  0x96   : > { %979 = vperm.xlu1 %3323, %v535_v63  }
  0x97   : > { %v557_v41 = vpop.permute.xlu0 %556 }
  0x98   : > { %v555_v42 = vpop.permute.xlu1 %554 }
  0x99   : > { %v571_v46 = vsel %vm570_vm3, %v555_v42, %v557_v41  ;;  %989 = vperm.xlu0 %3322, %v537_v2   ;;  %v3775_v2 = vld [vmem:[%s3647_s15 + $0x18] ss:$12 sps:$4 sm:$0xff]  }
  0x9a   : > { %984 = vperm.xlu1 %3323, %v536_v3  }
  0x9b   : > { %v3692_v43 = vpop.permute.xlu0 %558 }
  0x9c   : > { %v572_v44 = vsel %vm570_vm3, %v557_v41, %v3692_v43  ;;  %v565_v45 = vpop.permute.xlu1 %564 }
  0x9d   : > { %1028 = vmatprep.subr.bf16.mxu0 %v572_v44 }
  0x9e   : > { %1029 = vmatpush1.bf16.msra.mxu0 %v571_v46 }
  0x9f   : > { %v3697_v47 = vpop.permute.xlu0 %566 }
  0xa0   : > { %v575_v48 = vsel %vm570_vm3, %v565_v45, %v3697_v47  ;;  %v563_v49 = vpop.permute.xlu1 %562 }
  0xa1   : > { %v574_v50 = vsel %vm570_vm3, %v563_v49, %v565_v45  ;;  %1030 = vmatprep.subr.bf16.mxu0 %v575_v48 }
  0xa2   : > { %1031 = vmatpush1.bf16.msra.mxu0 %v574_v50 }
  0xa3   : > { %v608_v51 = vpop.permute.xlu0 %607 }
  0xa4   : > { %v3702_v52 = vpop.permute.xlu1 %609 }
  0xa5   : > { %v623_v53 = vsel %vm621_vm4, %v608_v51, %v3702_v52 }
  0xa6   : > { %1032 = vmatprep.subr.bf16.mxu0 %v623_v53 }
  0xa7   : > { %v606_v54 = vpop.permute.xlu0 %605 }
  0xa8   : > { %v622_v55 = vsel %vm621_vm4, %v606_v54, %v608_v51  ;;  %v616_v56 = vpop.permute.xlu1 %615 }
  0xa9   : > { %1033 = vmatpush1.bf16.msra.mxu0 %v622_v55  ;;  %v3762_v55 = vld [vmem:[%s3647_s15] ss:$12 sps:$4 sm:$0xff]  }
  0xab   : > { %v3707_v57 = vpop.permute.xlu0 %617 }
  0xac   : > { %v626_v58 = vsel %vm621_vm4, %v616_v56, %v3707_v57  ;;  %v614_v59 = vpop.permute.xlu1 %613 }
  0xad   : > { %v625_v60 = vsel %vm621_vm4, %v614_v59, %v616_v56  ;;  %1034 = vmatprep.subr.bf16.mxu0 %v626_v58  ;;  %v3765_v56 = vld [vmem:[%s3647_s15 + $0x1c] ss:$12 sps:$4 sm:$0xff]  }
  0xae   : > { %1035 = vmatpush1.bf16.msra.mxu0 %v625_v60 }
  0xaf   : > { %v659_v61 = vpop.permute.xlu0 %658 }
  0xb0   : > { %v3719_v0 = vpop.permute.xlu1 %660 }
  0xb1   : > { %v674_v1 = vsel %vm672_vm5, %v659_v61, %v3719_v0 }
  0xb2   : > { %1036 = vmatprep.subr.bf16.mxu0 %v674_v1 }
  0xb3   : > { %v657_v4 = vpop.permute.xlu0 %656 }
  0xb4   : > { %v673_v5 = vsel %vm672_vm5, %v657_v4, %v659_v61  ;;  %v667_v6 = vpop.permute.xlu1 %666 }
  0xb5   : > { %1037 = vmatpush1.bf16.msra.mxu0 %v673_v5 }
  0xb7   : > { %v3724_v7 = vpop.permute.xlu0 %668 }
  0xb8   : > { %v677_v8 = vsel %vm672_vm5, %v667_v6, %v3724_v7  ;;  %v665_v9 = vpop.permute.xlu1 %664 }
  0xb9   : > { %v676_v10 = vsel %vm672_vm5, %v665_v9, %v667_v6  ;;  %1038 = vmatprep.subr.bf16.mxu0 %v677_v8  ;;  %v947_v9 = vld [vmem:[#allocation5 + $0xe8] sm:$0xff] }
  0xba   : > { %1039 = vmatpush1.bf16.msra.mxu0 %v676_v10 }
  0xbb   : > { %v710_v11 = vpop.permute.xlu0 %709 }
  0xbc   : > { %v3729_v12 = vpop.permute.xlu1 %711 }
  0xbd   : > { %v725_v13 = vsel %vm723_vm6, %v710_v11, %v3729_v12 }
  0xbe   : > { %1040 = vmatprep.subr.bf16.mxu0 %v725_v13  ;;  %v3330_v13 = vld [vmem:[%s3647_s15 + $0x8] ss:$12 sps:$4 sm:$0xff]  }
  0xbf   : > { %v708_v14 = vpop.permute.xlu0 %707 }
  0xc0   : > { %v724_v15 = vsel %vm723_vm6, %v708_v14, %v710_v11  ;;  %v718_v16 = vpop.permute.xlu1 %717 }
  0xc1   : > { %1041 = vmatpush1.bf16.msra.mxu0 %v724_v15 }
  0xc3   : > { %v3734_v18 = vpop.permute.xlu0 %719 }
  0xc4   : > { %v728_v19 = vsel %vm723_vm6, %v718_v16, %v3734_v18  ;;  %v716_v20 = vpop.permute.xlu1 %715 }
  0xc5   : > { %v727_v21 = vsel %vm723_vm6, %v716_v20, %v718_v16  ;;  %1042 = vmatprep.subr.bf16.mxu0 %v728_v19 }
  0xc6   : > { %1043 = vmatpush1.bf16.msra.mxu0 %v727_v21 }
  0xc7   : > { %v769_v23 = vpop.permute.xlu0 %768  ;;  %1044 = vmatprep.subr.bf16.mxu0 %v3563_v22 }
  0xc8   : > { %v771_v24 = vpop.permute.xlu1 %770 }
  0xc9   : > { %791 = vst.msk [vmem:[#allocation5 + $0x100] sm:$0xff] %vm514_vm2, %v771_v24  ;;  %v780_v28 = vsel %vm778_vm7, %v769_v23, %v771_v24  ;;  %v3331_v24 = vld [vmem:[%s3647_s15 + $0x20] ss:$12 sps:$4 sm:$0xff]   ;;  %s4540_s15 = smov 127  }
  0xca   : > { %1045 = vmatpush1.bf16.msra.mxu0 %v3561_v17 }
  0xcb   : > { %v767_v25 = vpop.permute.xlu0 %766  ;;  %1046 = vmatprep.subr.bf16.mxu0 %v3570_v30 }
  0xcc   : > { %v775_v27 = vpop.permute.xlu1 %774  ;;  %v779_v22 = vsel %vm778_vm7, %v767_v25, %v769_v23 }
  0xce   : > { %1047 = vmatpush1.bf16.msra.mxu0 %v3567_v26 }
  0xcf   : > { %v777_v29 = vpop.permute.xlu0 %776  ;;  %1048 = vmatprep.subr.bf16.mxu0 %v780_v28 }
  0xd0   : > { %794 = vst.msk [vmem:[#allocation5 + $0x118] sm:$0xff] %vm514_vm2, %v777_v29  ;;  %v773_v31 = vpop.permute.xlu1 %772  ;;  %v782_v32 = vsel %vm778_vm7, %v775_v27, %v777_v29 }
  0xd1   : > { %v781_v30 = vsel %vm778_vm7, %v773_v31, %v775_v27 }
  0xd2   : > { %1049 = vmatpush1.bf16.msra.mxu0 %v779_v22 }
  0xd3   : > { %v810_v17 = vpop.permute.xlu0 %809  ;;  %1050 = vmatprep.subr.bf16.mxu0 %v782_v32 }
  0xd4   : > { %v812_v33 = vpop.permute.xlu1 %811 }
  0xd5   : > { %832 = vst.msk [vmem:[#allocation5 + $0x130] sm:$0xff] %vm514_vm2, %v812_v33  ;;  %v821_v26 = vsel %vm819_vm8, %v810_v17, %v812_v33 }
  0xd6   : > { %1051 = vmatpush1.bf16.msra.mxu0 %v781_v30 }
  0xd7   : > { %v808_v34 = vpop.permute.xlu0 %807  ;;  %1052 = vmatprep.subr.bf16.mxu0 %v821_v26 }
  0xd8   : > { %v820_v35 = vsel %vm819_vm8, %v808_v34, %v810_v17  ;;  %v816_v36 = vpop.permute.xlu1 %815 }
  0xda   : > { %1053 = vmatpush1.bf16.msra.mxu0 %v820_v35 }
  0xdb   : > { %v818_v37 = vpop.permute.xlu0 %817 }
  0xdc   : > { %v823_v38 = vsel %vm819_vm8, %v816_v36, %v818_v37  ;;  %835 = vst.msk [vmem:[#allocation5 + $0x148] sm:$0xff] %vm514_vm2, %v818_v37  ;;  %v814_v39 = vpop.permute.xlu1 %813  ;;  %v956_v22 = vld [vmem:[#allocation5 + $0x130] sm:$0xff] }
  0xdd   : > { %v822_v41 = vsel %vm819_vm8, %v814_v39, %v816_v36  ;;  %1054 = vmatprep.subr.bf16.mxu0 %v823_v38  ;;  %v1303_v36 = vld [vmem:[#allocation4 + $0x28] sm:$0xff]  ;;  %v1299_v37 = vld [vmem:[#allocation4] sm:$0xff]  ;;  %v1245_v38 = vlaneseq }
  0xde   : > { %1055 = vmatpush1.bf16.msra.mxu0 %v822_v41  ;;  %1323 = vrot.lane.b32.xlu0 %v1303_v36, %s3408_s17 }
  0xdf   : > { %v851_v42 = vpop.permute.xlu0 %850  ;;  %1315 = vrot.lane.b32.xlu1 %v1299_v37, %s3408_s17  ;;  %v3822_v39 = vshrl.u32 %v1245_v38, 7 }
  0xe0   : > { %v853_v44 = vpop.permute.xlu1 %852 }
  0xe1   : > { %v862_v45 = vsel %vm860_vm9, %v851_v42, %v853_v44  ;;  %873 = vst.msk [vmem:[#allocation5 + $0x160] sm:$0xff] %vm514_vm2, %v853_v44  ;;  %v1251_v41 = vsub.s32 1, %v3822_v39 }
  0xe2   : > { %1056 = vmatprep.subr.bf16.mxu0 %v862_v45  ;;  %1373 = vrot.lane.b32.xlu0 %v1303_v36, %s3409_s18  ;;  %v3831_v45 = vld [vmem:[%s4539_s0] sm:$0x7]  ;;  %s4543_s0 = smov 17  }
  0xe3   : > { %v849_v46 = vpop.permute.xlu0 %848  ;;  %1365 = vrot.lane.b32.xlu1 %v1299_v37, %s3409_s18 }
  0xe4   : > { %v861_v48 = vsel %vm860_vm9, %v849_v46, %v851_v42  ;;  %v857_v49 = vpop.permute.xlu1 %856  ;;  %v1247_v42 = vsub.s32 0, %v3822_v39 }
  0xe5   : > { %1057 = vmatpush1.bf16.msra.mxu0 %v861_v48 }
  0xe6   : > { %1423 = vrot.lane.b32.xlu0 %v1303_v36, %s4535_s19 }
  0xe7   : > { %v859_v50 = vpop.permute.xlu0 %858  ;;  %1415 = vrot.lane.b32.xlu1 %v1299_v37, %s4535_s19 }
  0xe8   : > { %v864_v51 = vsel %vm860_vm9, %v857_v49, %v859_v50  ;;  %876 = vst.msk [vmem:[#allocation5 + $0x178] sm:$0xff] %vm514_vm2, %v859_v50  ;;  %v855_v53 = vpop.permute.xlu1 %854  ;;  %v962_v33 = vld [vmem:[#allocation5 + $0x160] sm:$0xff] }
  0xe9   : > { %v863_v54 = vsel %vm860_vm9, %v855_v53, %v857_v49  ;;  %1058 = vmatprep.subr.bf16.mxu0 %v864_v51 }
  0xea   : > { %1059 = vmatpush1.bf16.msra.mxu0 %v863_v54  ;;  %1473 = vrot.lane.b32.xlu0 %v1303_v36, %s4537_s20  ;;  %v3838_v54 = vrot.slane %v3831_v45, %v1251_v41 }
  0xeb   : > { %v892_v58 = vpop.permute.xlu0 %891  ;;  %1465 = vrot.lane.b32.xlu1 %v1299_v37, %s4537_s20 }
  0xec   : > { %v894_v59 = vpop.permute.xlu1 %893 }
  0xed   : > { %v903_v60 = vsel %vm901_vm10, %v892_v58, %v894_v59  ;;  %914 = vst.msk [vmem:[#allocation5 + $0x190] sm:$0xff] %vm514_vm2, %v894_v59  ;;  %1061 = vmatmul.mubr.bf16.vlgmr.msra.gmra.mrb[0].mxu0 %v3762_v55 }
  0xee   : > { %1081 = vmatprep.subr.bf16.mxu0 %v903_v60  ;;  %1070 = vmatprep.mubr.bf16.mxu0 %v3765_v56 }
  0xef   : > { %v890_v61 = vpop.permute.xlu0 %889  ;;  %v965_v30 = vld [vmem:[#allocation5 + $0x178] sm:$0xff] }
  0xf0   : > { %v902_v62 = vsel %vm901_vm10, %v890_v61, %v892_v58  ;;  %v561_v63 = vpop.permute.xlu1 %560 }
  0xf1   : > { %v573_v1 = vsel %vm570_vm3, %v3692_v43, %v561_v63  ;;  %1082 = vmatpush1.bf16.msra.mxu0 %v902_v62 }
  0xf2   : > { %585 = vst.msk [vmem:[#allocation5 + $0x10] sm:$0xff] %vm514_vm2, %v573_v1 }
  0xf3   : > { %v898_v3 = vpop.permute.xlu0 %897 }
  0xf4   : > { %v900_v4 = vpop.permute.xlu1 %899  ;;  %v968_v34 = vld [vmem:[#allocation5 + $0x190] sm:$0xff] }
  0xf5   : > { %v905_v5 = vsel %vm901_vm10, %v898_v3, %v900_v4  ;;  %917 = vst.msk [vmem:[#allocation5 + $0x1a8] sm:$0xff] %vm514_vm2, %v900_v4  ;;  %1071 = vmatmul.mubr.bf16.gmra.mrb[4].mxu0 %v3775_v2 }
  0xf6   : > { %1083 = vmatprep.subr.bf16.mxu0 %v905_v5  ;;  %1113 = vmatprep.mubr.bf16.mxu0 %v3416_v40 }
  0xf7   : > { %v896_v6 = vpop.permute.xlu0 %895 }
  0xf8   : > { %v904_v43 = vsel %vm901_vm10, %v896_v6, %v898_v3  ;;  %v569_v8 = vpop.permute.xlu1 %568 }
  0xf9   : > { %v576_v10 = vsel %vm570_vm3, %v3697_v47, %v569_v8  ;;  %v920_v11 = vld [vmem:[#allocation5 + $0x10] sm:$0xff]  ;;  %1084 = vmatpush1.bf16.msra.mxu0 %v904_v43 }
  0xfa   : > { %588 = vst.msk [vmem:[#allocation5 + $0x28] sm:$0xff] %vm514_vm2, %v576_v10  ;;  %3094 = vmatpush3.bf16.msra.mxu1 %v920_v11 }
  0xfb   : > { %v612_v14 = vpop.permute.xlu0 %611  ;;  %3095 = vmatprep.subr.bf16.mxu1 %v947_v9 }
  0xfc   : > { %v624_v15 = vsel %vm621_vm4, %v3702_v52, %v612_v14  ;;  %v620_v16 = vpop.permute.xlu1 %619  ;;  %v971_v35 = vld [vmem:[#allocation5 + $0x1a8] sm:$0xff] }
  0xfd   : > { %636 = vst.msk [vmem:[#allocation5 + $0x40] sm:$0xff] %vm514_vm2, %v624_v15  ;;  %v627_v19 = vsel %vm621_vm4, %v3707_v57, %v620_v16  ;;  %3059 = vmatmul.mubr.msk.bf16.vlgmr.msra.gmra.mrb[0].mxu0 %vm514_vm2, %v3330_v13  ;;  %v950_v57 = vld [vmem:[#allocation5 + $0x100] sm:$0xff] }
  0xfe   : > { %639 = vst.msk [vmem:[#allocation5 + $0x58] sm:$0xff] %vm514_vm2, %v627_v19  ;;  %1123 = vmatprep.mubr.bf16.mxu0 %v3416_v40 }
  0xff   : > { %v663_v47 = vpop.permute.xlu0 %662 }
 0x100   : > { %v675_v20 = vsel %vm672_vm5, %v3719_v0, %v663_v47  ;;  %v671_v21 = vpop.permute.xlu1 %670 }
 0x101   : > { %687 = vst.msk [vmem:[#allocation5 + $0x70] sm:$0xff] %vm514_vm2, %v675_v20  ;;  %v678_v52 = vsel %vm672_vm5, %v3724_v7, %v671_v21  ;;  %v923_v23 = vld [vmem:[#allocation5 + $0x28] sm:$0xff]  ;;  %v953_v7 = vld [vmem:[#allocation5 + $0x118] sm:$0xff] }
 0x102   : > { %690 = vst.msk [vmem:[#allocation5 + $0x88] sm:$0xff] %vm514_vm2, %v678_v52  ;;  %3096 = vmatpush3.bf16.msra.mxu1 %v923_v23 }
 0x103   : > { %3097 = vmatprep.subr.bf16.mxu1 %v950_v57  ;;  %v714_v25 = vpop.permute.xlu0 %713 }
 0x104   : > { %v726_v27 = vsel %vm723_vm6, %v3729_v12, %v714_v25  ;;  %v722_v28 = vpop.permute.xlu1 %721  ;;  %v926_v29 = vld [vmem:[#allocation5 + $0x40] sm:$0xff]  ;;  %v959_v12 = vld [vmem:[#allocation5 + $0x148] sm:$0xff] }
 0x105   : > { %738 = vst.msk [vmem:[#allocation5 + $0xa0] sm:$0xff] %vm514_vm2, %v726_v27  ;;  %v729_v0 = vsel %vm723_vm6, %v3734_v18, %v722_v28  ;;  %3060 = vmatmul.mubr.msk.bf16.gmra.mrb[4].mxu0 %vm514_vm2, %v3331_v24  ;;  %v929_v31 = vld [vmem:[#allocation5 + $0x58] sm:$0xff] }
 0x106   : > { %741 = vst.msk [vmem:[#allocation5 + $0xb8] sm:$0xff] %vm514_vm2, %v729_v0  ;;  %3098 = vmatpush3.bf16.msra.mxu1 %v926_v29 }
 0x107   : > { %3099 = vmatprep.subr.bf16.mxu1 %v953_v7 }
 0x108   : > { %v932_v32 = vld [vmem:[#allocation5 + $0x70] sm:$0xff] }
 0x109   : > { %v935_v17 = vld [vmem:[#allocation5 + $0x88] sm:$0xff] }
 0x10a   : > { %3100 = vmatpush3.bf16.msra.mxu1 %v929_v31 }
 0x10b   : > { %3101 = vmatprep.subr.bf16.mxu1 %v956_v22 }
 0x10c   : > { %v938_v18 = vld [vmem:[#allocation5 + $0xa0] sm:$0xff] }
 0x10d   : > { %v941_v26 = vld [vmem:[#allocation5 + $0xb8] sm:$0xff] }
 0x10e   : > { %3102 = vmatpush3.bf16.msra.mxu1 %v932_v32 }
 0x10f   : > { %3103 = vmatprep.subr.bf16.mxu1 %v959_v12 }
 0x112   : > { %3104 = vmatpush3.bf16.msra.mxu1 %v935_v17 }
 0x113   : > { %3105 = vmatprep.subr.bf16.mxu1 %v962_v33 }
 0x114   : > { %v3826_v44 = vpop.permute.xlu0 %974 }
 0x115   : > { %v3834_v50 = vpop.permute.xlu1 %979 }
 0x116   : > { %3106 = vmatpush3.bf16.msra.mxu1 %v938_v18 }
 0x117   : > { %3107 = vmatprep.subr.bf16.mxu1 %v965_v30 }
 0x118   : > { %v990_v43 = vpop.permute.xlu0 %989 }
 0x119   : > { %v985_v3 = vpop.permute.xlu1 %984 }
 0x11a   : > { %3108 = vmatpush3.bf16.msra.mxu1 %v941_v26 }
 0x11b   : > { %3189 = vmatprep.subr.bf16.mxu1 %v968_v34 }
 0x11d   : > { %1167 = vmatmul.mubr.bf16.vlgmr.msra.gmra.mrb[0].mxu1 %v3762_v55 }
 0x11e   : > { %3190 = vmatpush3.bf16.msra.mxu1 %v968_v34  ;;  %1174 = vmatprep.mubr.bf16.mxu1 %v3765_v56  ;;  %v3843_v56 = vrot.slane %v3831_v45, %v1247_v42 }
 0x11f   : > { %3191 = vmatprep.subr.bf16.mxu1 %v971_v35 }
 0x122   : > { %3192 = vmatpush3.bf16.msra.mxu1 %v971_v35  ;;  %v1255_v35 = vsub.s32 2, %v3822_v39 }
 0x125   : > { %1175 = vmatmul.mubr.bf16.gmra.mrb[4].mxu1 %v3775_v2 }
 0x126   : > { %3193 = vmatprep.mubr.msk.bf16.mxu1 %vm514_vm2, %v3330_v13 }
 0x12d   : > { %3194 = vmatmul.mubr.msk.bf16.vlgmr.msra.gmra.mrb[8].mxu1 %vm514_vm2, %v3331_v24 }
 0x1d0   : > { %v1115_v46 = vpop.f32.mrb[0].mxu0 }
 0x1d1   : > { %v1117_v48 = vpop.f32.mrb[1].mxu0  ;;  %v3213_v49 = vadd.f32 %v1115_v46, %v3826_v44 }
 0x1d2   : > { %v1119_v51 = vpop.f32.mrb[2].mxu0  ;;  %v3214_v53 = vadd.f32 %v1117_v48, %v3826_v44 }
 0x1d3   : > { %v1232_v55 = vmax.f32 %v3213_v49, 0.0  ;;  %v1121_v58 = vpop.f32.mrb[3].mxu0  ;;  %v3215_v59 = vadd.f32 %v1119_v51, %v3834_v50 }
 0x1d4   : > { %v1233_v60 = vmax.f32 %v3214_v53, 0.0  ;;  %v3216_v61 = vadd.f32 %v1121_v58, %v3834_v50 }
 0x1d5   : > { %v1260_v62 = vmul.f32 %v3843_v56, %v1232_v55  ;;  %v1235_v63 = vmax.f32 %v3215_v59, 0.0  ;;  %v3887_v55 = vrot.slane %v3831_v45, %v1255_v35 }
 0x1d6   : > { %v1261_v1 = vmul.f32 %v3838_v54, %v1233_v60  ;;  %v1236_v2 = vmax.f32 %v3216_v61, 0.0 }
 0x1d7   : > { %v1263_v4 = vmul.f32 %v3843_v56, %v1235_v63 }
 0x1d8   : > { %v1264_v5 = vmul.f32 %v3838_v54, %v1236_v2  ;;  %v1125_v6 = vpop.f32.mrb[4].mxu0 }
 0x1d9   : > { %v3851_v8 = vpack.c.bf16 %v1263_v4, %v1260_v62  ;;  %v1127_v9 = vpop.f32.mrb[5].mxu0  ;;  %v3217_v10 = vadd.f32 %v1125_v6, %v985_v3 }
 0x1da   : > { %v3853_v11 = vpack.c.bf16 %v1264_v5, %v1261_v1  ;;  %v1129_v13 = vpop.f32.mrb[6].mxu0  ;;  %v3218_v14 = vadd.f32 %v1127_v9, %v985_v3 }
 0x1db   : > { %v3219_v15 = vadd.f32 %v1129_v13, %v990_v43  ;;  %v1238_v16 = vmax.f32 %v3217_v10, 0.0  ;;  %v1131_v19 = vpop.f32.mrb[7].mxu0 }
 0x1dc   : > { %v1239_v47 = vmax.f32 %v3218_v14, 0.0  ;;  %1319 = vrot.lane.b32.xlu0 %v3853_v11, %s3408_s17  ;;  %v3220_v20 = vadd.f32 %v1131_v19, %v990_v43 }
 0x1dd   : > { %v1241_v21 = vmax.f32 %v3219_v15, 0.0  ;;  %v1266_v52 = vmul.f32 %v3843_v56, %v1238_v16 }
 0x1de   : > { %v1267_v23 = vmul.f32 %v3838_v54, %v1239_v47  ;;  %v1242_v24 = vmax.f32 %v3220_v20, 0.0 }
 0x1df   : > { %v1269_v57 = vmul.f32 %v3843_v56, %v1241_v21 }
 0x1e0   : > { %1369 = vrot.lane.b32.xlu0 %v3853_v11, %s3409_s18  ;;  %v1270_v25 = vmul.f32 %v3838_v54, %v1242_v24 }
 0x1e1   : > { %v3863_v27 = vpack.c.bf16 %v1269_v57, %v1266_v52 }
 0x1e2   : > { %v3865_v28 = vpack.c.bf16 %v1270_v25, %v1267_v23 }
 0x1e4   : > { %1419 = vrot.lane.b32.xlu0 %v3853_v11, %s4535_s19 }
 0x1e8   : > { %1469 = vrot.lane.b32.xlu0 %v3853_v11, %s4537_s20 }
 0x1ec   : > { %1325 = vrot.lane.b32.xlu0 %v3863_v27, %s3408_s17 }
 0x1f0   : > { %v3109_v29 = vpop.f32.mrb[0].mxu1  ;;  %1525 = vrot.lane.b32.xlu0 %v3853_v11, %s4540_s15 }
 0x1f1   : > { %v3110_v0 = vpop.f32.mrb[1].mxu1 }
 0x1f2   : > { %v3111_v7 = vadd.f32 %v3110_v0, %v3109_v29  ;;  %v3112_v31 = vpop.f32.mrb[2].mxu1 }
 0x1f3   : > { %v3113_v22 = vpop.f32.mrb[3].mxu1 }
 0x1f4   : > { %v3114_v32 = vadd.f32 %v3113_v22, %v3112_v31  ;;  %1375 = vrot.lane.b32.xlu0 %v3863_v27, %s3409_s18  ;;  %v1169_v37 = vadd.f32 %v3111_v7, %v3826_v44  ;;  %v1316_v7 = vpop.permute.xlu1 %1315 }
 0x1f6   : > { %v1172_v51 = vadd.f32 %v3114_v32, %v3834_v50 }
 0x1f8   : > { %v3115_v12 = vpop.f32.mrb[4].mxu1  ;;  %1425 = vrot.lane.b32.xlu0 %v3863_v27, %s4535_s19 }
 0x1f9   : > { %v3116_v17 = vpop.f32.mrb[5].mxu1 }
 0x1fa   : > { %v3117_v33 = vadd.f32 %v3116_v17, %v3115_v12  ;;  %v3118_v18 = vpop.f32.mrb[6].mxu1 }
 0x1fb   : > { %v3119_v30 = vpop.f32.mrb[7].mxu1 }
 0x1fc   : > { %v3120_v26 = vadd.f32 %v3119_v30, %v3118_v18  ;;  %1475 = vrot.lane.b32.xlu0 %v3863_v27, %s4537_s20  ;;  %v1177_v34 = vadd.f32 %v3117_v33, %v985_v3  ;;  %v1366_v33 = vpop.permute.xlu1 %1365 }
 0x1fe   : > { %v1180_v46 = vadd.f32 %v3120_v26, %v990_v43  ;;  %v1324_v43 = vpop.permute.xlu0 %1323 }
 0x200   : > { %v3195_v36 = vpop.f32.mrb[8].mxu1  ;;  %1523 = vrot.lane.b32.xlu0 %v3851_v8, %s4540_s15  ;;  %v1416_v26 = vpop.permute.xlu1 %1415 }
 0x201   : > { %v1226_v38 = vadd.f32 %v3195_v36, %v1177_v34  ;;  %v1217_v41 = vpop.f32.mrb[9].mxu1 }
 0x202   : > { %v1218_v48 = vadd.f32 %v1217_v41, %v1169_v37  ;;  %v3196_v49 = vpop.f32.mrb[10].mxu1  ;;  %v1374_v10 = vpop.permute.xlu0 %1373 }
 0x203   : > { %v1240_v53 = vmax.f32 %v1226_v38, 0.0  ;;  %v1229_v58 = vadd.f32 %v3196_v49, %v1180_v46  ;;  %v1220_v59 = vpop.f32.mrb[11].mxu1 }
 0x204   : > { %v1234_v60 = vmax.f32 %v1218_v48, 0.0  ;;  %v1221_v61 = vadd.f32 %v1220_v59, %v1172_v51  ;;  %1529 = vrot.lane.b32.xlu0 %v3863_v27, %s4540_s15  ;;  %v1466_v37 = vpop.permute.xlu1 %1465 }
 0x205   : > { %v1243_v44 = vmax.f32 %v1229_v58, 0.0  ;;  %v1268_v63 = vmul.f32 %v3887_v55, %v1240_v53 }
 0x206   : > { %v1237_v62 = vmax.f32 %v1221_v61, 0.0  ;;  %v1262_v2 = vmul.f32 %v3887_v55, %v1234_v60  ;;  %v1424_v14 = vpop.permute.xlu0 %1423 }
 0x207   : > { %v1271_v1 = vmul.f32 %v3887_v55, %v1243_v44 }
 0x208   : > { %v1265_v50 = vmul.f32 %v3887_v55, %v1237_v62  ;;  %1565 = vrot.lane.b32.xlu0 %v3853_v11, %s4533_s28 }
 0x209   : > { %v1277_v45 = vpack.c.bf16 %v1271_v1, %v1268_v63 }
 0x20a   : > { %v1274_v3 = vpack.c.bf16 %v1265_v50, %v1262_v2  ;;  %v1474_v15 = vpop.permute.xlu0 %1473 }
 0x20b   : > { %1283 = vst.msk [vmem:[#allocation4 + $0x40] sm:$0xff] %vm514_vm2, %v1277_v45 }
 0x20c   : > { %1280 = vst.msk [vmem:[#allocation4 + $0x18] sm:$0xff] %vm514_vm2, %v1274_v3  ;;  %1563 = vrot.lane.b32.xlu0 %v3851_v8, %s4533_s28 }
 0x210   : > { %1569 = vrot.lane.b32.xlu0 %v3863_v27, %s4533_s28 }
 0x212   : > { %v3903_v4 = vld [vmem:[#allocation4 + $0x40] sm:$0xff] }
 0x213   : > { %v1302_v5 = vld [vmem:[#allocation4 + $0x18] sm:$0xff]  ;;  %1510 = vst.msk [vmem:[#allocation5 + $0xe8] sm:$0xff] %vm514_vm2, %v3903_v4 }
 0x214   : > { %1321 = vrot.lane.b32.xlu1 %v1302_v5, %s3408_s17  ;;  %1507 = vst.msk [vmem:[#allocation5 + $0xd0] sm:$0xff] %vm514_vm2, %v1302_v5  ;;  %1531 = vrot.lane.b32.xlu0 %v3865_v28, %s4540_s15 }
 0x218   : > { %1317 = vrot.lane.b32.xlu1 %v3851_v8, %s3408_s17  ;;  %1605 = vrot.lane.b32.xlu0 %v3853_v11, %s4541_s30 }
 0x21a   : > { %v1700_v1 = vld [vmem:[#allocation5 + $0xe8] sm:$0xff] }
 0x21b   : > { %v1697_v6 = vld [vmem:[#allocation5 + $0xd0] sm:$0xff] }
 0x21c   : > { %3125 = vmatprep.subr.bf16.mxu0 %v1697_v6  ;;  %1367 = vrot.lane.b32.xlu1 %v3851_v8, %s3409_s18 }
 0x21d   : > { %1571 = vrot.lane.b32.xlu0 %v3865_v28, %s4533_s28  ;;  %s4545_s28 = smul.u32 48, %s3388_s21 }
 0x220   : > { %1417 = vrot.lane.b32.xlu1 %v3851_v8, %s4535_s19  ;;  %s3945_s19 = scalar_lea.vmem %s4518_s5, %s3713_s14 }
 0x221   : > { %1603 = vrot.lane.b32.xlu0 %v3851_v8, %s4541_s30  ;;  %v1296_v9 = vld [vmem:[%s3945_s19 + $0x8] sm:$0xff]  ;;  %v1298_v13 = vld [vmem:[%s3945_s19 + $0x18] sm:$0xff]  ;;  %v1295_v32 = vld [vmem:[%s3945_s19] sm:$0xff] }
 0x222   : > { %v1297_v18 = vld [vmem:[%s3945_s19 + $0x10] sm:$0xff]  ;;  %s2069_s19 = scalar_lea.vmem %s4522_s9, %s3713_s14 }
 0x223   : > { %v2071_v39 = vld [vmem:[%s2069_s19 + $0x8] sm:$0xff] }
 0x224   : > { %1467 = vrot.lane.b32.xlu1 %v3851_v8, %s4537_s20 }
 0x225   : > { %1611 = vrot.lane.b32.xlu0 %v3865_v28, %s4541_s30 }
 0x228   : > { %1327 = vrot.lane.b32.xlu1 %v3865_v28, %s3408_s17 }
 0x229   : > { %1609 = vrot.lane.b32.xlu0 %v3863_v27, %s4541_s30 }
 0x22c   : > { %1527 = vrot.lane.b32.xlu1 %v1302_v5, %s4540_s15 }
 0x22d   : > { %1479 = vrot.lane.b32.xlu0 %v3903_v4, %s4537_s20 }
 0x230   : > { %1377 = vrot.lane.b32.xlu1 %v3865_v28, %s3409_s18 }
 0x231   : > { %1647 = vrot.lane.b32.xlu0 %v1302_v5, %s4542_s22 }
 0x234   : > { %1329 = vrot.lane.b32.xlu1 %v3903_v4, %s3408_s17  ;;  %s4544_s17 = smov 111  }
 0x235   : > { %1651 = vrot.lane.b32.xlu0 %v3865_v28, %s4542_s22 }
 0x238   : > { %1427 = vrot.lane.b32.xlu1 %v3865_v28, %s4543_s0 }
 0x239   : > { %1649 = vrot.lane.b32.xlu0 %v3863_v27, %s4542_s22 }
 0x23c   : > { %1533 = vrot.lane.b32.xlu1 %v3903_v4, %s4540_s15 }
 0x23d   : > { %1732 = vperm.xlu0 %3322, %v1296_v9  }
 0x240   : > { %1477 = vrot.lane.b32.xlu1 %v3865_v28, %s4537_s20  ;;  %s3971_s20 = scalar_lea.vmem %s4517_s4, %s4545_s28 }
 0x241   : > { %1742 = vperm.xlu0 %3322, %v1298_v13   ;;  %v3334_v47 = vld [vmem:[%s3971_s20 + $0x4] ss:$12 sps:$4 sm:$0xff]  }
 0x242   : > { %1813 = vmatprep.mubr.bf16.mxu1 %v3334_v47  ;;  %1919 = vmatprep.mubr.bf16.mxu0 %v3334_v47 }
 0x244   : > { %1371 = vrot.lane.b32.xlu1 %v1302_v5, %s3409_s18 }
 0x248   : > { %1567 = vrot.lane.b32.xlu1 %v1302_v5, %s4544_s17 }
 0x24c   : > { %1379 = vrot.lane.b32.xlu1 %v3903_v4, %s3409_s18  ;;  %s4546_s18 = smov 1  }
 0x24e   : > { %v1320_v16 = vpop.permute.xlu0 %1319 }
 0x250   : > { %1573 = vrot.lane.b32.xlu1 %v3903_v4, %s4544_s17  ;;  %s2040_s17 = scalar_lea.vmem %s4520_s7, %s3388_s21 }
 0x252   : > { %v3963_v19 = vpop.permute.xlu0 %1369 }
 0x254   : > { %1421 = vrot.lane.b32.xlu1 %v1302_v5, %s4543_s0 }
 0x256   : > { %v3974_v20 = vpop.permute.xlu0 %1419 }
 0x258   : > { %1607 = vrot.lane.b32.xlu1 %v1302_v5, %s4541_s30 }
 0x25a   : > { %v3977_v21 = vpop.permute.xlu0 %1469 }
 0x25c   : > { %1429 = vrot.lane.b32.xlu1 %v3903_v4, %s4543_s0 }
 0x25e   : > { %v1326_v52 = vpop.permute.xlu0 %1325 }
 0x25f   : > { %v3982_v23 = vsel %vm570_vm3, %v1324_v43, %v1326_v52 }
 0x260   : > { %1613 = vrot.lane.b32.xlu1 %v3903_v4, %s4541_s30 }
 0x262   : > { %v3986_v24 = vpop.permute.xlu0 %1525 }
 0x264   : > { %1471 = vrot.lane.b32.xlu1 %v1302_v5, %s4546_s18 }
 0x266   : > { %v3989_v57 = vpop.permute.xlu0 %1375 }
 0x267   : > { %v3993_v25 = vsel %vm621_vm4, %v1374_v10, %v3989_v57 }
 0x268   : > { %1645 = vrot.lane.b32.xlu1 %v3853_v11, %s4542_s22 }
 0x26a   : > { %v3997_v29 = vpop.permute.xlu0 %1425 }
 0x26b   : > { %v4001_v0 = vsel %vm672_vm5, %v1424_v14, %v3997_v29 }
 0x26c   : > { %1643 = vrot.lane.b32.xlu1 %v3851_v8, %s4542_s22 }
 0x26e   : > { %v4005_v31 = vpop.permute.xlu0 %1475 }
 0x26f   : > { %v4009_v22 = vsel %vm723_vm6, %v1474_v15, %v4005_v31 }
 0x270   : > { %1653 = vrot.lane.b32.xlu1 %v3903_v4, %s4542_s22 }
 0x272   : > { %v1524_v12 = vpop.permute.xlu0 %1523 }
 0x273   : > { %v4016_v17 = vsel %vm778_vm7, %v1524_v12, %v3986_v24 }
 0x274   : > { %1727 = vperm.xlu1 %3323, %v1295_v32  }
 0x276   : > { %v1530_v30 = vpop.permute.xlu0 %1529 }
 0x278   : > { %1737 = vperm.xlu1 %3323, %v1297_v18  }
 0x27a   : > { %v4019_v34 = vpop.permute.xlu0 %1565 }
 0x27e   : > { %v1564_v35 = vpop.permute.xlu0 %1563 }
 0x27f   : > { %v4023_v36 = vsel %vm819_vm8, %v1564_v35, %v4019_v34 }
 0x282   : > { %v1570_v38 = vpop.permute.xlu0 %1569 }
 0x286   : > { %v1322_v41 = vpop.permute.xlu1 %1321  ;;  %v1532_v46 = vpop.permute.xlu0 %1531 }
 0x287   : > { %v1333_v48 = vsel %vm570_vm3, %v1320_v16, %v1322_v41  ;;  %v4027_v49 = vsel %vm778_vm7, %v1530_v30, %v1532_v46 }
 0x288   : > { %1345 = vst.msk [vmem:[#allocation5 + $0x10] sm:$0xff] %vm514_vm2, %v1333_v48 }
 0x28a   : > { %v1318_v51 = vpop.permute.xlu1 %1317  ;;  %v4030_v53 = vpop.permute.xlu0 %1605 }
 0x28b   : > { %v1331_v58 = vsel %vm570_vm3, %v1316_v7, %v1318_v51  ;;  %v1332_v59 = vsel %vm570_vm3, %v1318_v51, %v1320_v16 }
 0x28c   : > { %1781 = vmatprep.subr.bf16.mxu1 %v1332_v59 }
 0x28d   : > { %1782 = vmatpush1.bf16.msra.mxu1 %v1331_v58 }
 0x28e   : > { %v1368_v60 = vpop.permute.xlu1 %1367 }
 0x28f   : > { %v1381_v61 = vsel %vm621_vm4, %v1366_v33, %v1368_v60  ;;  %v1382_v44 = vsel %vm621_vm4, %v1368_v60, %v3963_v19  ;;  %v1673_v62 = vld [vmem:[#allocation5 + $0x10] sm:$0xff]  ;;  %v4037_v63 = vpop.permute.xlu0 %1571 }
 0x290   : > { %3126 = vmatpush3.bf16.msra.mxu0 %v1673_v62  ;;  %v4041_v2 = vsel %vm819_vm8, %v1570_v38, %v4037_v63 }
 0x291   : > { %3127 = vmatprep.subr.bf16.mxu0 %v1700_v1  ;;  %v3332_v1 = vld [vmem:[%s3971_s20] ss:$12 sps:$4 sm:$0xff]  }
 0x292   : > { %v1418_v50 = vpop.permute.xlu1 %1417 }
 0x293   : > { %v1431_v45 = vsel %vm672_vm5, %v1416_v26, %v1418_v50  ;;  %v1432_v3 = vsel %vm672_vm5, %v1418_v50, %v3974_v20  ;;  %v1604_v4 = vpop.permute.xlu0 %1603 }
 0x294   : > { %v4048_v5 = vsel %vm860_vm9, %v1604_v4, %v4030_v53 }
 0x296   : > { %v1468_v6 = vpop.permute.xlu1 %1467 }
 0x297   : > { %v1481_v43 = vsel %vm723_vm6, %v1466_v37, %v1468_v6  ;;  %v1482_v9 = vsel %vm723_vm6, %v1468_v6, %v3977_v21  ;;  %v4053_v10 = vpop.permute.xlu0 %1611 }
 0x29a   : > { %v1328_v13 = vpop.permute.xlu1 %1327 }
 0x29b   : > { %v1335_v14 = vsel %vm570_vm3, %v1326_v52, %v1328_v13  ;;  %v1610_v15 = vpop.permute.xlu0 %1609 }
 0x29c   : > { %1783 = vmatprep.subr.bf16.mxu1 %v1335_v14  ;;  %v4058_v16 = vsel %vm860_vm9, %v1610_v15, %v4053_v10 }
 0x29d   : > { %1784 = vmatpush1.bf16.msra.mxu1 %v3982_v23 }
 0x29e   : > { %v1528_v47 = vpop.permute.xlu1 %1527  ;;  %1785 = vmatprep.subr.bf16.mxu1 %v1382_v44 }
 0x29f   : > { %v1536_v7 = vsel %vm778_vm7, %v3986_v24, %v1528_v47  ;;  %1547 = vst.msk [vmem:[#allocation5 + $0x100] sm:$0xff] %vm514_vm2, %v1528_v47  ;;  %v1480_v32 = vpop.permute.xlu0 %1479 }
 0x2a1   : > { %1786 = vmatpush1.bf16.msra.mxu1 %v1381_v61 }
 0x2a2   : > { %v1378_v12 = vpop.permute.xlu1 %1377 }
 0x2a3   : > { %v1385_v52 = vsel %vm621_vm4, %v3989_v57, %v1378_v12  ;;  %v4066_v33 = vpop.permute.xlu0 %1647 }
 0x2a4   : > { %1787 = vmatprep.subr.bf16.mxu1 %v1385_v52  ;;  %1667 = vst.msk [vmem:[#allocation5 + $0x190] sm:$0xff] %vm514_vm2, %v4066_v33 }
 0x2a5   : > { %1788 = vmatpush1.bf16.msra.mxu1 %v3993_v25 }
 0x2a6   : > { %v1330_v23 = vpop.permute.xlu1 %1329  ;;  %1789 = vmatprep.subr.bf16.mxu1 %v1432_v3  ;;  %v1703_v41 = vld [vmem:[#allocation5 + $0x100] sm:$0xff] }
 0x2a7   : > { %v1336_v24 = vsel %vm570_vm3, %v1328_v13, %v1330_v23  ;;  %v4072_v18 = vpop.permute.xlu0 %1651 }
 0x2a8   : > { %1348 = vst.msk [vmem:[#allocation5 + $0x28] sm:$0xff] %vm514_vm2, %v1336_v24 }
 0x2a9   : > { %1790 = vmatpush1.bf16.msra.mxu1 %v1431_v45 }
 0x2aa   : > { %v1428_v30 = vpop.permute.xlu1 %1427 }
 0x2ab   : > { %v1435_v57 = vsel %vm672_vm5, %v3997_v29, %v1428_v30  ;;  %v1650_v26 = vpop.permute.xlu0 %1649  ;;  %v1721_v47 = vld [vmem:[#allocation5 + $0x190] sm:$0xff] }
 0x2ac   : > { %1791 = vmatprep.subr.bf16.mxu1 %v1435_v57  ;;  %v4079_v35 = vsel %vm901_vm10, %v1650_v26, %v4072_v18 }
 0x2ad   : > { %1792 = vmatpush1.bf16.msra.mxu1 %v4001_v0 }
 0x2ae   : > { %v1534_v25 = vpop.permute.xlu1 %1533  ;;  %1793 = vmatprep.subr.bf16.mxu1 %v1482_v9 }
 0x2af   : > { %v1538_v37 = vsel %vm778_vm7, %v1532_v46, %v1534_v25  ;;  %1550 = vst.msk [vmem:[#allocation5 + $0x118] sm:$0xff] %vm514_vm2, %v1534_v25  ;;  %v1676_v38 = vld [vmem:[#allocation5 + $0x28] sm:$0xff] }
 0x2b0   : > { %3128 = vmatpush3.bf16.msra.mxu0 %v1676_v38 }
 0x2b1   : > { %3129 = vmatprep.subr.bf16.mxu0 %v1703_v41  ;;  %1794 = vmatpush1.bf16.msra.mxu1 %v1481_v43  ;;  %v3337_v43 = vld [vmem:[%s3971_s20 + $0x18] ss:$12 sps:$4 sm:$0xff]  }
 0x2b2   : > { %v1478_v29 = vpop.permute.xlu1 %1477 }
 0x2b3   : > { %v1485_v48 = vsel %vm723_vm6, %v4005_v31, %v1478_v29  ;;  %v1486_v51 = vsel %vm723_vm6, %v1478_v29, %v1480_v32 }
 0x2b4   : > { %1498 = vst.msk [vmem:[#allocation5 + $0xb8] sm:$0xff] %vm514_vm2, %v1486_v51  ;;  %1795 = vmatprep.subr.bf16.mxu1 %v1485_v48 }
 0x2b5   : > { %1796 = vmatpush1.bf16.msra.mxu1 %v4009_v22 }
 0x2b6   : > { %v1372_v0 = vpop.permute.xlu1 %1371  ;;  %1797 = vmatprep.subr.bf16.mxu1 %v3853_v11 }
 0x2b7   : > { %v1383_v46 = vsel %vm621_vm4, %v3963_v19, %v1372_v0  ;;  %v1706_v19 = vld [vmem:[#allocation5 + $0x118] sm:$0xff] }
 0x2b8   : > { %1395 = vst.msk [vmem:[#allocation5 + $0x40] sm:$0xff] %vm514_vm2, %v1383_v46 }
 0x2b9   : > { %1798 = vmatpush1.bf16.msra.mxu1 %v3851_v8 }
 0x2ba   : > { %v1568_v58 = vpop.permute.xlu1 %1567  ;;  %1799 = vmatprep.subr.bf16.mxu1 %v3865_v28 }
 0x2bb   : > { %v1576_v31 = vsel %vm819_vm8, %v4019_v34, %v1568_v58  ;;  %1587 = vst.msk [vmem:[#allocation5 + $0x130] sm:$0xff] %vm514_vm2, %v1568_v58 }
 0x2bc   : > { %v1733_v38 = vpop.permute.xlu0 %1732 }
 0x2bd   : > { %1800 = vmatpush1.bf16.msra.mxu1 %v3863_v27 }
 0x2be   : > { %v1380_v22 = vpop.permute.xlu1 %1379  ;;  %1801 = vmatprep.subr.bf16.mxu1 %v1536_v7  ;;  %v3338_v7 = vld [vmem:[%s3971_s20 + $0x8] ss:$12 sps:$4 sm:$0xff]  }
 0x2bf   : > { %v1386_v11 = vsel %vm621_vm4, %v1378_v12, %v1380_v22  ;;  %v1679_v59 = vld [vmem:[#allocation5 + $0x40] sm:$0xff]  ;;  %v3339_v12 = vld [vmem:[%s3971_s20 + $0x20] ss:$12 sps:$4 sm:$0xff]  }
 0x2c0   : > { %1398 = vst.msk [vmem:[#allocation5 + $0x58] sm:$0xff] %vm514_vm2, %v1386_v11  ;;  %3130 = vmatpush3.bf16.msra.mxu0 %v1679_v59 }
 0x2c1   : > { %3131 = vmatprep.subr.bf16.mxu0 %v1706_v19  ;;  %1802 = vmatpush1.bf16.msra.mxu1 %v4016_v17 }
 0x2c2   : > { %v1574_v8 = vpop.permute.xlu1 %1573  ;;  %1803 = vmatprep.subr.bf16.mxu1 %v1538_v37  ;;  %v1709_v61 = vld [vmem:[#allocation5 + $0x130] sm:$0xff] }
 0x2c3   : > { %v1578_v28 = vsel %vm819_vm8, %v4037_v63, %v1574_v8  ;;  %1590 = vst.msk [vmem:[#allocation5 + $0x148] sm:$0xff] %vm514_vm2, %v1574_v8 }
 0x2c5   : > { %1804 = vmatpush1.bf16.msra.mxu1 %v4027_v49 }
 0x2c6   : > { %v1422_v27 = vpop.permute.xlu1 %1421  ;;  %1805 = vmatprep.subr.bf16.mxu1 %v1576_v31 }
 0x2c7   : > { %v1433_v34 = vsel %vm672_vm5, %v3974_v20, %v1422_v27  ;;  %v1682_v60 = vld [vmem:[#allocation5 + $0x58] sm:$0xff] }
 0x2c8   : > { %1445 = vst.msk [vmem:[#allocation5 + $0x70] sm:$0xff] %vm514_vm2, %v1433_v34  ;;  %3132 = vmatpush3.bf16.msra.mxu0 %v1682_v60  ;;  %v1743_v34 = vpop.permute.xlu0 %1742 }
 0x2c9   : > { %3133 = vmatprep.subr.bf16.mxu0 %v1709_v61  ;;  %1806 = vmatpush1.bf16.msra.mxu1 %v4023_v36 }
 0x2ca   : > { %v1608_v17 = vpop.permute.xlu1 %1607  ;;  %1807 = vmatprep.subr.bf16.mxu1 %v1578_v28  ;;  %v1712_v36 = vld [vmem:[#allocation5 + $0x148] sm:$0xff] }
 0x2cb   : > { %v1616_v44 = vsel %vm860_vm9, %v4030_v53, %v1608_v17  ;;  %1627 = vst.msk [vmem:[#allocation5 + $0x160] sm:$0xff] %vm514_vm2, %v1608_v17 }
 0x2cd   : > { %1808 = vmatpush1.bf16.msra.mxu1 %v4041_v2  ;;  %v3335_v2 = vld [vmem:[%s3971_s20 + $0x1c] ss:$12 sps:$4 sm:$0xff]   ;;  %s2017_s20 = scalar_lea.vmem %s4519_s6, %s3713_s14 }
 0x2ce   : > { %v1430_v20 = vpop.permute.xlu1 %1429  ;;  %1809 = vmatprep.subr.bf16.mxu1 %v1616_v44 }
 0x2cf   : > { %v1436_v49 = vsel %vm672_vm5, %v1428_v30, %v1430_v20  ;;  %v1685_v62 = vld [vmem:[#allocation5 + $0x70] sm:$0xff] }
 0x2d0   : > { %1448 = vst.msk [vmem:[#allocation5 + $0x88] sm:$0xff] %vm514_vm2, %v1436_v49  ;;  %3134 = vmatpush3.bf16.msra.mxu0 %v1685_v62 }
 0x2d1   : > { %3135 = vmatprep.subr.bf16.mxu0 %v1712_v36  ;;  %1810 = vmatpush1.bf16.msra.mxu1 %v4048_v5 }
 0x2d2   : > { %v1614_v63 = vpop.permute.xlu1 %1613  ;;  %v1715_v4 = vld [vmem:[#allocation5 + $0x160] sm:$0xff] }
 0x2d3   : > { %v1618_v53 = vsel %vm860_vm9, %v4053_v10, %v1614_v63  ;;  %1630 = vst.msk [vmem:[#allocation5 + $0x178] sm:$0xff] %vm514_vm2, %v1614_v63 }
 0x2d4   : > { %1811 = vmatprep.subr.bf16.mxu1 %v1618_v53 }
 0x2d5   : > { %1812 = vmatpush1.bf16.msra.mxu1 %v4058_v16  ;;  %v1694_v16 = vld [vmem:[#allocation5 + $0xb8] sm:$0xff] }
 0x2d6   : > { %v1472_v50 = vpop.permute.xlu1 %1471 }
 0x2d7   : > { %v1483_v45 = vsel %vm723_vm6, %v3977_v21, %v1472_v50  ;;  %v1688_v3 = vld [vmem:[#allocation5 + $0x88] sm:$0xff] }
 0x2d8   : > { %1495 = vst.msk [vmem:[#allocation5 + $0xa0] sm:$0xff] %vm514_vm2, %v1483_v45  ;;  %3136 = vmatpush3.bf16.msra.mxu0 %v1688_v3  ;;  %1814 = vmatmul.mubr.bf16.vlgmr.msra.gmra.mrb[12].mxu1 %v3332_v1 }
 0x2d9   : > { %3137 = vmatprep.subr.bf16.mxu0 %v1715_v4  ;;  %1823 = vmatprep.mubr.bf16.mxu1 %v3335_v2 }
 0x2da   : > { %v1646_v5 = vpop.permute.xlu1 %1645  ;;  %v1718_v21 = vld [vmem:[#allocation5 + $0x178] sm:$0xff] }
 0x2db   : > { %v1656_v6 = vsel %vm901_vm10, %v1646_v5, %v4066_v33 }
 0x2dc   : > { %1834 = vmatprep.subr.bf16.mxu1 %v1656_v6 }
 0x2de   : > { %v1644_v9 = vpop.permute.xlu1 %1643 }
 0x2df   : > { %v1655_v10 = vsel %vm901_vm10, %v1644_v9, %v1646_v5  ;;  %v1691_v13 = vld [vmem:[#allocation5 + $0xa0] sm:$0xff] }
 0x2e0   : > { %3138 = vmatpush3.bf16.msra.mxu0 %v1691_v13  ;;  %1824 = vmatmul.mubr.bf16.gmra.mrb[16].mxu1 %v3337_v43 }
 0x2e1   : > { %3139 = vmatprep.subr.bf16.mxu0 %v1718_v21  ;;  %1835 = vmatpush1.bf16.msra.mxu1 %v1655_v10 }
 0x2e2   : > { %v1654_v14 = vpop.permute.xlu1 %1653  ;;  %1866 = vmatprep.mubr.bf16.mxu1 %v3416_v40 }
 0x2e3   : > { %v1658_v15 = vsel %vm901_vm10, %v4072_v18, %v1654_v14  ;;  %1670 = vst.msk [vmem:[#allocation5 + $0x1a8] sm:$0xff] %vm514_vm2, %v1654_v14 }
 0x2e4   : > { %3140 = vmatpush3.bf16.msra.mxu0 %v1694_v16  ;;  %1836 = vmatprep.subr.bf16.mxu1 %v1658_v15 }
 0x2e5   : > { %3197 = vmatprep.subr.bf16.mxu0 %v1721_v47  ;;  %1837 = vmatpush1.bf16.msra.mxu1 %v4079_v35 }
 0x2e7   : > { %1920 = vmatmul.mubr.bf16.vlgmr.msra.gmra.mrb[8].mxu0 %v3332_v1 }
 0x2e8   : > { %3198 = vmatpush3.bf16.msra.mxu0 %v1721_v47  ;;  %1927 = vmatprep.mubr.bf16.mxu0 %v3335_v2 }
 0x2e9   : > { %3070 = vmatmul.mubr.msk.bf16.vlgmr.msra.gmra.mrb[12].mxu1 %vm514_vm2, %v3338_v7 }
 0x2ea   : > { %v1724_v32 = vld [vmem:[#allocation5 + $0x1a8] sm:$0xff]  ;;  %1876 = vmatprep.mubr.bf16.mxu1 %v3416_v40 }
 0x2eb   : > { %3199 = vmatprep.subr.bf16.mxu0 %v1724_v32 }
 0x2ec   : > { %3200 = vmatpush3.bf16.msra.mxu0 %v1724_v32 }
 0x2ef   : > { %1928 = vmatmul.mubr.bf16.gmra.mrb[12].mxu0 %v3337_v43 }
 0x2f0   : > { %3201 = vmatprep.mubr.msk.bf16.mxu0 %vm514_vm2, %v3338_v7 }
 0x2f1   : > { %3071 = vmatmul.mubr.msk.bf16.gmra.mrb[16].mxu1 %vm514_vm2, %v3339_v12 }
 0x2f3   : > { %v1728_v25 = vpop.permute.xlu1 %1727 }
 0x2f7   : > { %3202 = vmatmul.mubr.msk.bf16.vlgmr.msra.gmra.mrb[16].mxu0 %vm514_vm2, %v3339_v12  ;;  %v1738_v19 = vpop.permute.xlu1 %1737 }
 0x3ba   : > { %v3141_v52 = vpop.f32.mrb[8].mxu0 }
 0x3bb   : > { %v3142_v33 = vpop.f32.mrb[9].mxu0 }
 0x3bc   : > { %v3143_v23 = vadd.f32 %v3142_v33, %v3141_v52  ;;  %v3144_v24 = vpop.f32.mrb[10].mxu0  ;;  %v1868_v18 = vpop.f32.mrb[12].mxu1 }
 0x3bd   : > { %v3145_v30 = vpop.f32.mrb[11].mxu0  ;;  %v1870_v57 = vpop.f32.mrb[13].mxu1  ;;  %v3221_v58 = vadd.f32 %v1868_v18, %v1728_v25 }
 0x3be   : > { %v3146_v26 = vadd.f32 %v3145_v30, %v3144_v24  ;;  %v1872_v35 = vpop.f32.mrb[14].mxu1  ;;  %v3222_v31 = vadd.f32 %v1870_v57, %v1728_v25  ;;  %v1922_v44 = vadd.f32 %v3143_v23, %v1728_v25  ;;  %v2018_v57 = vld [vmem:[%s2017_s20] sm:$0xff] }
 0x3bf   : > { %v1874_v40 = vpop.f32.mrb[15].mxu1  ;;  %v3223_v8 = vadd.f32 %v1872_v35, %v1733_v38  ;;  %v4143_v60 = vmul.f32 %v3221_v58, %v3843_v56  ;;  %v2019_v35 = vld [vmem:[%s2017_s20 + $0x8] sm:$0xff] }
 0x3c0   : > { %v3224_v28 = vadd.f32 %v1874_v40, %v1733_v38  ;;  %v4146_v61 = vmul.f32 %v3222_v31, %v3838_v54  ;;  %v1925_v50 = vadd.f32 %v3146_v26, %v1733_v38  ;;  %v2021_v38 = vld [vmem:[%s2017_s20 + $0x18] sm:$0xff] }
 0x3c1   : > { %v4149_v53 = vmul.f32 %v3223_v8, %v3843_v56 }
 0x3c2   : > { %v3147_v37 = vpop.f32.mrb[12].mxu0  ;;  %v4152_v45 = vmul.f32 %v3224_v28, %v3838_v54  ;;  %v1997_v10 = vadd.f32 %v4146_v61, %v4143_v60 }
 0x3c3   : > { %v3148_v41 = vpop.f32.mrb[13].mxu0 }
 0x3c4   : > { %v3149_v29 = vadd.f32 %v3148_v41, %v3147_v37  ;;  %v3150_v48 = vpop.f32.mrb[14].mxu0  ;;  %v1878_v51 = vpop.f32.mrb[16].mxu1  ;;  %v2002_v7 = vadd.f32 %v4152_v45, %v4149_v53 }
 0x3c5   : > { %v3151_v0 = vpop.f32.mrb[15].mxu0  ;;  %v1880_v46 = vpop.f32.mrb[17].mxu1  ;;  %v3225_v3 = vadd.f32 %v1878_v51, %v1738_v19 }
 0x3c6   : > { %v3152_v22 = vadd.f32 %v3151_v0, %v3150_v48  ;;  %v1882_v11 = vpop.f32.mrb[18].mxu1  ;;  %v1930_v27 = vadd.f32 %v3149_v29, %v1738_v19  ;;  %v3226_v4 = vadd.f32 %v1880_v46, %v1738_v19  ;;  %v2020_v29 = vld [vmem:[%s2017_s20 + $0x10] sm:$0xff] }
 0x3c7   : > { %v1884_v59 = vpop.f32.mrb[19].mxu1  ;;  %v3227_v36 = vadd.f32 %v1882_v11, %v1743_v34  ;;  %v4179_v32 = vmul.f32 %v3225_v3, %v3843_v56 }
 0x3c8   : > { %v1933_v62 = vadd.f32 %v3152_v22, %v1743_v34  ;;  %v3228_v63 = vadd.f32 %v1884_v59, %v1743_v34  ;;  %v4182_v12 = vmul.f32 %v3226_v4, %v3838_v54 }
 0x3c9   : > { %v4163_v21 = vmul.f32 %v3227_v36, %v3843_v56  ;;  %v2046_v36 = vld [vmem:[%s2044_s29 + $0x8] sm:$0xff] }
 0x3ca   : > { %v3203_v17 = vpop.f32.mrb[16].mxu0  ;;  %v4166_v14 = vmul.f32 %v3228_v63, %v3838_v54  ;;  %v2007_v56 = vadd.f32 %v4182_v12, %v4179_v32  ;;  %v2045_v63 = vld [vmem:[%s2044_s29] sm:$0xff] }
 0x3cb   : > { %v1979_v20 = vadd.f32 %v3203_v17, %v1930_v27  ;;  %v1970_v49 = vpop.f32.mrb[17].mxu0 }
 0x3cc   : > { %v1971_v1 = vadd.f32 %v1970_v49, %v1922_v44  ;;  %v3204_v2 = vpop.f32.mrb[18].mxu0  ;;  %v2041_v44 = vld [vmem:[%s2040_s17] sm:$0x1] }
 0x3cd   : > { %v1982_v5 = vadd.f32 %v3204_v2, %v1933_v62  ;;  %v1973_v6 = vpop.f32.mrb[19].mxu0  ;;  %v4169_v15 = vmul.f32 %v1979_v20, %v3887_v55  ;;  %v2048_v2 = vld [vmem:[%s2044_s29 + $0x18] sm:$0xff] }
 0x3ce   : > { %v4155_v43 = vmul.f32 %v1971_v1, %v3887_v55  ;;  %v1974_v9 = vadd.f32 %v1973_v6, %v1925_v50  ;;  %v2047_v50 = vld [vmem:[%s2044_s29 + $0x10] sm:$0xff] }
 0x3cf   : > { %v4160_v13 = vmul.f32 %v1982_v5, %v3887_v55  ;;  %v2008_v18 = vsel %vm514_vm2, %v4169_v15, 0.0 }
 0x3d0   : > { %v1998_v16 = vsel %vm514_vm2, %v4155_v43, 0.0  ;;  %v4174_v47 = vmul.f32 %v1974_v9, %v3887_v55  ;;  %v2012_v55 = vadd.f32 %v4166_v14, %v4163_v21  ;;  %v2009_v30 = vadd.f32 %v2008_v18, %v2007_v56  ;;  %v2072_v18 = vld [vmem:[%s2069_s19 + $0x10] sm:$0xff] }
 0x3d1   : > { %v1999_v52 = vadd.f32 %v1998_v16, %v1997_v10  ;;  %v2013_v33 = vsel %vm514_vm2, %v4160_v13, 0.0 }
 0x3d2   : > { %v2003_v23 = vsel %vm514_vm2, %v4174_v47, 0.0  ;;  %v2014_v54 = vadd.f32 %v2013_v33, %v2012_v55 }
 0x3d3   : > { %2000 = vadd.xlane.f32.xlu1 %v1999_v52  ;;  %v2004_v24 = vadd.f32 %v2003_v23, %v2002_v7 }
 0x3d5   : > { %2005 = vadd.xlane.f32.xlu0 %v2004_v24  ;;  %v2073_v24 = vld [vmem:[%s2069_s19 + $0x18] sm:$0xff] }
 0x3d7   : > { %2015 = vadd.xlane.f32.xlu1 %v2014_v54 }
 0x3d9   : > { %2010 = vadd.xlane.f32.xlu0 %v2009_v30 }
 0x460   : > { %v2001_v26 = vpop.xlane.xlu1 %2000 }
 0x461   : > { %v2022_v25 = vmul.f32 %v2018_v57, %v2001_v26 }
 0x462   : > { %v2006_v40 = vpop.xlane.xlu0 %2005 }
 0x463   : > { %v2023_v37 = vmul.f32 %v2019_v35, %v2006_v40  ;;  %v2027_v0 = vsel %vm2026_vm11, %v2022_v25, 0.0 }
 0x464   : > { %v2016_v41 = vpop.xlane.xlu1 %2015 }
 0x465   : > { %v2028_v48 = vsel %vm2026_vm11, %v2023_v37, 0.0  ;;  %v2025_v46 = vmul.f32 %v2021_v38, %v2016_v41 }
 0x466   : > { %v2011_v51 = vpop.xlane.xlu0 %2010  ;;  %v2029_v31 = vadd.f32 %v2028_v48, %v2027_v0 }
 0x467   : > { %v2024_v58 = vmul.f32 %v2020_v29, %v2011_v51  ;;  %v2032_v59 = vsel %vm2026_vm11, %v2025_v46, 0.0 }
 0x469   : > { %v2030_v22 = vsel %vm2026_vm11, %v2024_v58, 0.0 }
 0x46a   : > { %v2031_v11 = vadd.f32 %v2030_v22, %v2029_v31 }
 0x46c   : > { %v2033_v19 = vadd.f32 %v2032_v59, %v2031_v11 }
 0x46e   : > { %v2034_v8 = vrot.slane %v2033_v19, 4 }
 0x470   : > { %v2035_v28 = vadd.f32 %v2034_v8, %v2033_v19 }
 0x472   : > { %v2036_v27 = vrot.slane %v2035_v28, 2 }
 0x474   : > { %v2037_v34 = vadd.f32 %v2036_v27, %v2035_v28  ;;  %v2105_v27 = vld [vmem:[#allocation2 + $0x30] sm:$0xff] }
 0x476   : > { %v2038_v17 = vrot.slane %v2037_v34, 1 }
 0x478   : > { %v2039_v20 = vadd.f32 %v2038_v17, %v2037_v34  ;;  %v2106_v34 = vld [vmem:[#allocation2 + $0x38] sm:$0xff]  ;;  %v2107_v17 = vld [vmem:[#allocation2 + $0x40] sm:$0xff] }
 0x47a   : > { %v2042_v49 = vadd.f32 %v2041_v44, %v2039_v20 }
 0x47c   : > { %v2043_v62 = vmax.f32 %v2042_v49, 0.0 }
 0x47e   : > { %v2052_v1 = vrot.slane %v2043_v62, %v1247_v42  ;;  %v2070_v42 = vld [vmem:[%s2069_s19] sm:$0xff] }
 0x480   : > { %v2054_v3 = vmul.f32 %v2052_v1, %v2046_v36  ;;  %v2053_v4 = vmul.f32 %v2052_v1, %v2045_v63  ;;  %v2056_v9 = vmul.f32 %v2052_v1, %v2048_v2  ;;  %v2055_v10 = vmul.f32 %v2052_v1, %v2047_v50  ;;  %v2102_v36 = vld [vmem:[#allocation2 + $0x8] sm:$0xff]  ;;  %v2103_v63 = vld [vmem:[#allocation2 + $0x10] sm:$0xff]  ;;  %v2104_v1 = vld [vmem:[#allocation2 + $0x18] sm:$0xff] }
 0x482   : > { %v2060_v5 = vsel %vm2026_vm11, %v2054_v3, 0.0  ;;  %v2057_v6 = vsel %vm2026_vm11, %v2053_v4, 0.0  ;;  %v2066_v16 = vsel %vm2026_vm11, %v2056_v9, 0.0  ;;  %v2063_v7 = vsel %vm2026_vm11, %v2055_v10, 0.0 }
 0x483   : > { %2061 = vadd.xlane.f32.xlu1 %v2060_v5  ;;  %2058 = vadd.xlane.f32.xlu0 %v2057_v6 }
 0x487   : > { %2067 = vadd.xlane.f32.xlu1 %v2066_v16  ;;  %2064 = vadd.xlane.f32.xlu0 %v2063_v7  ;;  %v2108_v7 = vld [vmem:[#allocation2 + $0x58] sm:$0xff] }
 0x510   : > { %v2062_v52 = vpop.xlane.xlu1 %2061  ;;  %v2059_v33 = vpop.xlane.xlu0 %2058 }
 0x511   : > { %v2075_v23 = vadd.f32 %v2071_v39, %v2062_v52  ;;  %v2074_v55 = vadd.f32 %v2070_v42, %v2059_v33  ;;  %v2111_v42 = vld [vmem:[#allocation2 + $0x80] sm:$0xff]  ;;  %v2112_v33 = vld [vmem:[#allocation2 + $0x88] sm:$0xff] }
 0x513   : > { %v3075_v56 = vmul.f32 -1.442695, %v2075_v23  ;;  %v3074_v54 = vmul.f32 -1.442695, %v2074_v55  ;;  %v2113_v23 = vld [vmem:[#allocation2 + $0x90] sm:$0xff] }
 0x514   : > { %v2068_v30 = vpop.xlane.xlu1 %2067  ;;  %v2065_v57 = vpop.xlane.xlu0 %2064 }
 0x515   : > { %3340 = vpow2.f32 %v3075_v56  ;;  %v2077_v26 = vadd.f32 %v2073_v24, %v2068_v30  ;;  %v2076_v35 = vadd.f32 %v2072_v18, %v2065_v57 }
 0x516   : > { %3342 = vpow2.f32 %v3074_v54 }
 0x517   : > { %v3077_v40 = vmul.f32 -1.442695, %v2077_v26  ;;  %v3076_v25 = vmul.f32 -1.442695, %v2076_v35 }
 0x519   : > { %3344 = vpow2.f32 %v3077_v40 }
 0x51a   : > { %3346 = vpow2.f32 %v3076_v25 }
 0x51f   : > { %v3341_v37 = vpop.eup %3340 }
 0x520   : > { %v3343_v38 = vpop.eup %3342  ;;  %v2091_v41 = vadd.f32 1.0, %v3341_v37 }
 0x521   : > { %v2090_v29 = vadd.f32 1.0, %v3343_v38 }
 0x522   : > { %3348 = vrcp.f32 %v2091_v41 }
 0x523   : > { %v3345_v48 = vpop.eup %3344  ;;  %3350 = vrcp.f32 %v2090_v29 }
 0x524   : > { %v3347_v51 = vpop.eup %3346  ;;  %v2093_v0 = vadd.f32 1.0, %v3345_v48 }
 0x525   : > { %v2092_v46 = vadd.f32 1.0, %v3347_v51 }
 0x526   : > { %3352 = vrcp.f32 %v2093_v0 }
 0x527   : > { %3354 = vrcp.f32 %v2092_v46 }
 0x52c   : > { %v3349_v58 = vpop.eup %3348 }
 0x52d   : > { %v3351_v31 = vpop.eup %3350  ;;  %v2115_v22 = vmul.f32 0.7, %v3349_v58 }
 0x52e   : > { %v2114_v11 = vmul.f32 0.7, %v3351_v31 }
 0x52f   : > { %2125 = vperm.xlu1 %3323, %v2115_v22  }
 0x530   : > { %v3353_v59 = vpop.eup %3352  ;;  %2120 = vperm.xlu0 %3322, %v2114_v11  }
 0x531   : > { %v3355_v19 = vpop.eup %3354  ;;  %v2117_v8 = vmul.f32 0.7, %v3353_v59 }
 0x532   : > { %v2116_v28 = vmul.f32 0.7, %v3355_v19 }
 0x534   : > { %2135 = vperm.xlu0 %3322, %v2117_v8   ;;  %2130 = vperm.xlu1 %3323, %v2116_v28  }
 0x5ae   : > { %v2126_v44 = vpop.permute.xlu1 %2125 }
 0x5af   : > { %v2141_v20 = vmul.f32 %v2126_v44, %v4149_v53  ;;  %v2142_v49 = vmul.f32 %v2126_v44, %v4152_v45  ;;  %v2143_v62 = vmul.f32 %v2126_v44, %v4174_v47  ;;  %v2121_v2 = vpop.permute.xlu0 %2120  ;;  %v2109_v45 = vld [vmem:[#allocation2 + $0x60] sm:$0xff]  ;;  %v2110_v47 = vld [vmem:[#allocation2 + $0x68] sm:$0xff] }
 0x5b0   : > { %v2138_v50 = vmul.f32 %v2121_v2, %v4143_v60  ;;  %v2139_v3 = vmul.f32 %v2121_v2, %v4146_v61  ;;  %v2140_v4 = vmul.f32 %v2121_v2, %v4155_v43 }
 0x5b1   : > { %v2153_v5 = vadd.f32 %v2141_v20, %v2105_v27  ;;  %v2154_v6 = vadd.f32 %v2142_v49, %v2106_v34  ;;  %v2155_v9 = vadd.f32 %v2143_v62, %v2107_v17 }
 0x5b2   : > { %v2150_v10 = vadd.f32 %v2138_v50, %v2102_v36  ;;  %v2151_v16 = vadd.f32 %v2139_v3, %v2103_v63  ;;  %v2152_v53 = vadd.f32 %v2140_v4, %v2104_v1 }
 0x5b3   : > { %2165 = vst [vmem:[#allocation2 + $0x30] sm:$0xff] %v2153_v5  ;;  %2166 = vst [vmem:[#allocation2 + $0x38] sm:$0xff] %v2154_v6  ;;  %v2131_v39 = vpop.permute.xlu1 %2130  ;;  %v2136_v60 = vpop.permute.xlu0 %2135 }
 0x5b4   : > { %2167 = vst.msk [vmem:[#allocation2 + $0x40] sm:$0xff] %vm514_vm2, %v2155_v9  ;;  %2162 = vst [vmem:[#allocation2 + $0x8] sm:$0xff] %v2150_v10  ;;  %v2144_v61 = vmul.f32 %v2131_v39, %v4179_v32  ;;  %v2145_v43 = vmul.f32 %v2131_v39, %v4182_v12  ;;  %v2146_v52 = vmul.f32 %v2131_v39, %v4169_v15 }
 0x5b5   : > { %2163 = vst [vmem:[#allocation2 + $0x10] sm:$0xff] %v2151_v16  ;;  %2164 = vst.msk [vmem:[#allocation2 + $0x18] sm:$0xff] %vm514_vm2, %v2152_v53  ;;  %v2147_v55 = vmul.f32 %v2136_v60, %v4163_v21  ;;  %v2148_v24 = vmul.f32 %v2136_v60, %v4166_v14  ;;  %v2149_v18 = vmul.f32 %v2136_v60, %v4160_v13 }
 0x5b6   : > { %v2156_v56 = vadd.f32 %v2144_v61, %v2108_v7  ;;  %v2157_v54 = vadd.f32 %v2145_v43, %v2109_v45  ;;  %v2158_v30 = vadd.f32 %v2146_v52, %v2110_v47 }
 0x5b7   : > { %v2159_v57 = vadd.f32 %v2147_v55, %v2111_v42  ;;  %v2160_v26 = vadd.f32 %v2148_v24, %v2112_v33  ;;  %v2161_v35 = vadd.f32 %v2149_v18, %v2113_v23 }
 0x5b8   : > { %2168 = vst [vmem:[#allocation2 + $0x58] sm:$0xff] %v2156_v56  ;;  %2169 = vst [vmem:[#allocation2 + $0x60] sm:$0xff] %v2157_v54 }
 0x5b9   : > { %2170 = vst.msk [vmem:[#allocation2 + $0x68] sm:$0xff] %vm514_vm2, %v2158_v30  ;;  %2171 = vst [vmem:[#allocation2 + $0x80] sm:$0xff] %v2159_v57 }
 0x5ba   : > { %2172 = vst [vmem:[#allocation2 + $0x88] sm:$0xff] %v2160_v26  ;;  %2173 = vst.msk [vmem:[#allocation2 + $0x90] sm:$0xff] %vm514_vm2, %v2161_v35 }
 0x5bb PF: > { %p3078_p8 = scmp.ne.s32.totalorder %s3388_s21, 2 }
 0x5bc   : > { %v2179_v21 = vld [vmem:[#allocation2 + $0x8] sm:$0xff] (!%p3078_p8)  ;;  %v2184_v13 = vld [vmem:[#allocation2 + $0x30] sm:$0xff] (!%p3078_p8)  ;;  %v2178_v14 = vld [vmem:[#allocation2] sm:$0xff] (!%p3078_p8)  ;;  %s3417_s14 = smov (!%p3078_p8), 19   ;;  %s3418_s21 = smov (!%p3078_p8), 18   ;;  %vm2212_vm12 = vcmask (!%p3078_p8), 261120  }
 0x5bd   : > { %2177 = sbr.rel (%p3078_p8) target bundleno = 1935 (0x78f), region = 80  ;;  %v4237_v15 = vpack.c.bf16 (!%p3078_p8), %v2184_v13, %v2179_v21  ;;  %v2183_v32 = vld [vmem:[#allocation2 + $0x28] sm:$0xff] (!%p3078_p8)  ;;  %v2180_v12 = vld [vmem:[#allocation2 + $0x10] sm:$0xff] (!%p3078_p8)  ;;  %v2185_v40 = vld [vmem:[#allocation2 + $0x38] sm:$0xff] (!%p3078_p8)  ;;  %s3419_s20 = smov (!%p3078_p8), 17   ;;  %v3422_v27 = vmov (!%p3078_p8), 0  }
 0x5be   : > { %v2198_v25 = vpack.c.bf16 (!%p3078_p8), %v2183_v32, %v2178_v14  ;;  %v4239_v37 = vpack.c.bf16 (!%p3078_p8), %v2185_v40, %v2180_v12  ;;  %v2188_v0 = vld [vmem:[#allocation2 + $0x50] sm:$0xff] (!%p3078_p8)  ;;  %v2193_v46 = vld [vmem:[#allocation2 + $0x78] sm:$0xff] (!%p3078_p8)  ;;  %v2186_v11 = vld [vmem:[#allocation2 + $0x40] sm:$0xff] (!%p3078_p8)  ;;  %s3420_s30 = smov (!%p3078_p8), 109   ;;  %s3421_s22 = smov (!%p3078_p8), 1   ;;  %2806 = vmatprep.mubr.bf16.mxu1 (!%p3078_p8), %v3422_v27  ;;  %3356 = vset.pattern.permute.xlu0 (!%p3078_p8), %v3422_v27  ;;  %vm2263_vm13 = vcmask (!%p3078_p8), 154624  }
 0x5bf   : > { %v2189_v38 = vld [vmem:[#allocation2 + $0x58] sm:$0xff] (!%p3078_p8)  ;;  %v2190_v29 = vld [vmem:[#allocation2 + $0x60] sm:$0xff] (!%p3078_p8)  ;;  %2249 = vrot.lane.b32.xlu0 (!%p3078_p8), %v4237_v15, %s3417_s14  ;;  %v2203_v31 = vpack.c.bf16 (!%p3078_p8), %v2193_v46, %v2188_v0  ;;  %3357 = vset.pattern.permute.xlu1 (!%p3078_p8), %v3422_v27  ;;  %s3423_s17 = smov (!%p3078_p8), 127   ;;  %s3424_s28 = smov (!%p3078_p8), 111   ;;  %v2228_v62 = vld [vmem:[%s4524_s11 + $0x8] sm:$0xff] (!%p3078_p8)  ;;  %vm2314_vm14 = vcmask (!%p3078_p8), 146432  }
 0x5c0   : > { %v2194_v41 = vld [vmem:[#allocation2 + $0x80] sm:$0xff] (!%p3078_p8)  ;;  %2247 = vrot.lane.b32.xlu1 (!%p3078_p8), %v2198_v25, %s3417_s14  ;;  %v2181_v22 = vld [vmem:[#allocation2 + $0x18] sm:$0xff] (!%p3078_p8)  ;;  %v2191_v59 = vld [vmem:[#allocation2 + $0x68] sm:$0xff] (!%p3078_p8)  ;;  %s3425_s15 = smov (!%p3078_p8), 110   ;;  %vm2365_vm15 = vcmask (!%p3078_p8), 138240   ;;  %vm2594_vm0 = vcmask (!%p3078_p8), 891904  }
 0x5c1   : > { %v4243_v48 = vpack.c.bf16 (!%p3078_p8), %v2194_v41, %v2189_v38  ;;  %v2195_v51 = vld [vmem:[#allocation2 + $0x88] sm:$0xff] (!%p3078_p8)  ;;  %v2201_v19 = vpack.c.bf16 (!%p3078_p8), %v2186_v11, %v2181_v22  ;;  %v2196_v8 = vld [vmem:[#allocation2 + $0x90] sm:$0xff] (!%p3078_p8)  ;;  %v2227_v49 = vld [vmem:[%s4524_s11] sm:$0xff] (!%p3078_p8)  ;;  %vm2416_vm1 = vcmask (!%p3078_p8), 7168   ;;  %vm2471_vm2 = vcmask (!%p3078_p8), 1039360  }
 0x5c2   : > { %v4246_v58 = vpack.c.bf16 (!%p3078_p8), %v2195_v51, %v2190_v29  ;;  %v4248_v28 = vpack.c.bf16 (!%p3078_p8), %v2196_v8, %v2191_v59  ;;  %v4321_v34 = vld [vmem:[%s4523_s10 + $0x4] ss:$12 sps:$4 sm:$0xff] (!%p3078_p8)   ;;  %v2230_v63 = vld [vmem:[%s4524_s11 + $0x18] sm:$0xff] (!%p3078_p8)  ;;  %v4382_v38 = vld [vmem:[%s4523_s10 + $0x8] ss:$12 sps:$4 sm:$0xff] (!%p3078_p8)   ;;  %vm2512_vm3 = vcmask (!%p3078_p8), 908288  }
 0x5c3   : > { %2251 = vrot.lane.b32.xlu0 (!%p3078_p8), %v4239_v37, %s3417_s14  ;;  %2443 = vst.msk [vmem:[#allocation5 + $0xd0] sm:$0xff] (!%p3078_p8), %vm2212_vm12, %v2201_v19  ;;  %2753 = vmatprep.mubr.bf16.mxu0 (!%p3078_p8), %v4321_v34  ;;  %v2229_v50 = vld [vmem:[%s4524_s11 + $0x10] sm:$0xff] (!%p3078_p8)  ;;  %v4397_v11 = vld [vmem:[%s4523_s10 + $0x20] ss:$12 sps:$4 sm:$0xff] (!%p3078_p8)   ;;  %vm2553_vm4 = vcmask (!%p3078_p8), 900096  }
 0x5c4   : > { %2257 = vrot.lane.b32.xlu1 %v4243_v48, %s3417_s14  ;;  %2446 = vst.msk [vmem:[#allocation5 + $0xe8] sm:$0xff] %vm2212_vm12, %v4248_v28 }
 0x5c7   : > { %2259 = vrot.lane.b32.xlu0 %v4246_v58, %s3417_s14 }
 0x5c8   : > { %2255 = vrot.lane.b32.xlu1 %v2203_v31, %s3417_s14 }
 0x5ca   : > { %v2637_v40 = vld [vmem:[#allocation5 + $0xd0] sm:$0xff] }
 0x5cb   : > { %2300 = vrot.lane.b32.xlu0 %v4237_v15, %s3418_s21 }
 0x5cc   : > { %2302 = vrot.lane.b32.xlu1 %v4239_v37, %s3418_s21 }
 0x5cf   : > { %2298 = vrot.lane.b32.xlu0 %v2198_v25, %s3418_s21 }
 0x5d0   : > { %2308 = vrot.lane.b32.xlu1 %v4243_v48, %s3418_s21 }
 0x5d3   : > { %2310 = vrot.lane.b32.xlu0 %v4246_v58, %s3418_s21 }
 0x5d4   : > { %2306 = vrot.lane.b32.xlu1 %v2203_v31, %s3418_s21 }
 0x5d7   : > { %2351 = vrot.lane.b32.xlu0 %v4237_v15, %s3419_s20 }
 0x5d8   : > { %2353 = vrot.lane.b32.xlu1 %v4239_v37, %s3419_s20 }
 0x5db   : > { %2349 = vrot.lane.b32.xlu0 %v2198_v25, %s3419_s20 }
 0x5dc   : > { %2584 = vrot.lane.b32.xlu1 %v4239_v37, %s3420_s30 }
 0x5df   : > { %2586 = vrot.lane.b32.xlu0 %v2201_v19, %s3420_s30 }
 0x5e0   : > { %2582 = vrot.lane.b32.xlu1 %v4237_v15, %s3420_s30 }
 0x5e3   : > { %2359 = vrot.lane.b32.xlu0 %v4243_v48, %s3419_s20 }
 0x5e4   : > { %2361 = vrot.lane.b32.xlu1 %v4246_v58, %s3419_s20 }
 0x5e7   : > { %2357 = vrot.lane.b32.xlu0 %v2203_v31, %s3419_s20 }
 0x5e8   : > { %2590 = vrot.lane.b32.xlu1 %v4246_v58, %s3420_s30 }
 0x5eb   : > { %2592 = vrot.lane.b32.xlu0 %v4248_v28, %s3420_s30 }
 0x5ec   : > { %2588 = vrot.lane.b32.xlu1 %v4243_v48, %s3420_s30 }
 0x5ef   : > { %2402 = vrot.lane.b32.xlu0 %v4237_v15, %s3421_s22 }
 0x5f0   : > { %2404 = vrot.lane.b32.xlu1 %v4239_v37, %s3421_s22 }
 0x5f3   : > { %2400 = vrot.lane.b32.xlu0 %v2198_v25, %s3421_s22 }
 0x5f4   : > { %2253 = vrot.lane.b32.xlu1 %v2201_v19, %s3417_s14 }
 0x5f7   : > { %2410 = vrot.lane.b32.xlu0 %v4243_v48, %s3421_s22 }
 0x5f8   : > { %2412 = vrot.lane.b32.xlu1 %v4246_v58, %s3421_s22 }
 0x5fb   : > { %2408 = vrot.lane.b32.xlu0 %v2203_v31, %s3421_s22 }
 0x5fc   : > { %2261 = vrot.lane.b32.xlu1 %v4248_v28, %s3417_s14 }
 0x5ff   : > { %2304 = vrot.lane.b32.xlu0 %v2201_v19, %s3418_s21 }
 0x600   : > { %2463 = vrot.lane.b32.xlu1 %v2201_v19, %s3423_s17 }
 0x603   : > { %2312 = vrot.lane.b32.xlu0 %v4248_v28, %s3418_s21 }
 0x604   : > { %2469 = vrot.lane.b32.xlu1 %v4248_v28, %s3423_s17 }
 0x607   : > { %2461 = vrot.lane.b32.xlu0 %v4239_v37, %s3423_s17 }
 0x608   : > { %2459 = vrot.lane.b32.xlu1 %v4237_v15, %s3423_s17 }
 0x60b   : > { %2355 = vrot.lane.b32.xlu0 %v2201_v19, %s3419_s20 }
 0x60c   : > { %2504 = vrot.lane.b32.xlu1 %v2201_v19, %s3424_s28 }
 0x60f   : > { %2467 = vrot.lane.b32.xlu0 %v4246_v58, %s3423_s17 }
 0x610   : > { %2465 = vrot.lane.b32.xlu1 %v4243_v48, %s3423_s17 }
 0x613   : > { %2363 = vrot.lane.b32.xlu0 %v4248_v28, %s3419_s20 }
 0x614   : > { %2510 = vrot.lane.b32.xlu1 %v4248_v28, %s3424_s28 }
 0x617   : > { %2502 = vrot.lane.b32.xlu0 %v4239_v37, %s3424_s28 }
 0x618   : > { %2500 = vrot.lane.b32.xlu1 %v4237_v15, %s3424_s28 }
 0x61b   : > { %2406 = vrot.lane.b32.xlu0 %v2201_v19, %s3421_s22 }
 0x61c   : > { %2545 = vrot.lane.b32.xlu1 %v2201_v19, %s3425_s15 }
 0x61f   : > { %2508 = vrot.lane.b32.xlu0 %v4246_v58, %s3424_s28 }
 0x620   : > { %2506 = vrot.lane.b32.xlu1 %v4243_v48, %s3424_s28 }
 0x623   : > { %2414 = vrot.lane.b32.xlu0 %v4248_v28, %s3421_s22 }
 0x624   : > { %2551 = vrot.lane.b32.xlu1 %v4248_v28, %s3425_s15 }
 0x627   : > { %2543 = vrot.lane.b32.xlu0 %v4239_v37, %s3425_s15 }
 0x628   : > { %2541 = vrot.lane.b32.xlu1 %v4237_v15, %s3425_s15 }
 0x62b   : > { %2549 = vrot.lane.b32.xlu0 %v4246_v58, %s3425_s15 }
 0x62c   : > { %2547 = vrot.lane.b32.xlu1 %v4243_v48, %s3425_s15 }
 0x62f   : > { %2667 = vperm.xlu0 %3356, %v2227_v49  }
 0x630   : > { %2672 = vperm.xlu1 %3357, %v2228_v62  }
 0x631   : > { %v2250_v17 = vpop.permute.xlu0 %2249 }
 0x632   : > { %v2248_v44 = vpop.permute.xlu1 %2247 }
 0x633   : > { %v2264_v20 = vsel %vm2263_vm13, %v2248_v44, %v2250_v17  ;;  %2682 = vperm.xlu0 %3356, %v2230_v63   ;;  %v2640_v44 = vld [vmem:[#allocation5 + $0xe8] sm:$0xff] }
 0x634   : > { %2677 = vperm.xlu1 %3357, %v2229_v50  }
 0x635   : > { %v4338_v36 = vpop.permute.xlu0 %2251 }
 0x636   : > { %v2265_v1 = vsel %vm2263_vm13, %v2250_v17, %v4338_v36  ;;  %v2258_v2 = vpop.permute.xlu1 %2257 }
 0x637   : > { %2721 = vmatprep.subr.bf16.mxu0 %v2265_v1 }
 0x638   : > { %2722 = vmatpush1.bf16.msra.mxu0 %v2264_v20 }
 0x639   : > { %v4348_v3 = vpop.permute.xlu0 %2259 }
 0x63a   : > { %v2268_v4 = vsel %vm2263_vm13, %v2258_v2, %v4348_v3  ;;  %v2256_v5 = vpop.permute.xlu1 %2255 }
 0x63b   : > { %v2267_v6 = vsel %vm2263_vm13, %v2256_v5, %v2258_v2  ;;  %2723 = vmatprep.subr.bf16.mxu0 %v2268_v4 }
 0x63c   : > { %2724 = vmatpush1.bf16.msra.mxu0 %v2267_v6 }
 0x63d   : > { %v2301_v9 = vpop.permute.xlu0 %2300 }
 0x63e   : > { %v4353_v10 = vpop.permute.xlu1 %2302 }
 0x63f   : > { %v2316_v16 = vsel %vm2314_vm14, %v2301_v9, %v4353_v10 }
 0x640   : > { %2725 = vmatprep.subr.bf16.mxu0 %v2316_v16 }
 0x641   : > { %v2299_v53 = vpop.permute.xlu0 %2298 }
 0x642   : > { %v2315_v7 = vsel %vm2314_vm14, %v2299_v53, %v2301_v9  ;;  %v2309_v45 = vpop.permute.xlu1 %2308 }
 0x643   : > { %2726 = vmatpush1.bf16.msra.mxu0 %v2315_v7 }
 0x645   : > { %v4358_v47 = vpop.permute.xlu0 %2310 }
 0x646   : > { %v2319_v39 = vsel %vm2314_vm14, %v2309_v45, %v4358_v47  ;;  %v2307_v42 = vpop.permute.xlu1 %2306 }
 0x647   : > { %v2318_v60 = vsel %vm2314_vm14, %v2307_v42, %v2309_v45  ;;  %2727 = vmatprep.subr.bf16.mxu0 %v2319_v39 }
 0x648   : > { %2728 = vmatpush1.bf16.msra.mxu0 %v2318_v60 }
 0x649   : > { %v2352_v61 = vpop.permute.xlu0 %2351 }
 0x64a   : > { %v4363_v43 = vpop.permute.xlu1 %2353 }
 0x64b   : > { %v2367_v52 = vsel %vm2365_vm15, %v2352_v61, %v4363_v43 }
 0x64c   : > { %2729 = vmatprep.subr.bf16.mxu0 %v2367_v52 }
 0x64d   : > { %v2350_v33 = vpop.permute.xlu0 %2349 }
 0x64e   : > { %v2366_v23 = vsel %vm2365_vm15, %v2350_v33, %v2352_v61  ;;  %v2585_v55 = vpop.permute.xlu1 %2584 }
 0x64f   : > { %2730 = vmatpush1.bf16.msra.mxu0 %v2366_v23 }
 0x651   : > { %v2587_v24 = vpop.permute.xlu0 %2586 }
 0x652   : > { %v2596_v18 = vsel %vm2594_vm0, %v2585_v55, %v2587_v24  ;;  %2607 = vst.msk [vmem:[#allocation5 + $0x190] sm:$0xff] %vm2212_vm12, %v2587_v24  ;;  %v2583_v56 = vpop.permute.xlu1 %2582 }
 0x653   : > { %v2595_v54 = vsel %vm2594_vm0, %v2583_v56, %v2585_v55  ;;  %2774 = vmatprep.subr.bf16.mxu1 %v2596_v18 }
 0x654   : > { %2775 = vmatpush1.bf16.msra.mxu1 %v2595_v54 }
 0x655   : > { %v2360_v30 = vpop.permute.xlu0 %2359 }
 0x656   : > { %v4371_v57 = vpop.permute.xlu1 %2361 }
 0x657   : > { %v2370_v26 = vsel %vm2365_vm15, %v2360_v30, %v4371_v57 }
 0x658   : > { %2731 = vmatprep.subr.bf16.mxu0 %v2370_v26 }
 0x659   : > { %v2358_v35 = vpop.permute.xlu0 %2357 }
 0x65a   : > { %v2369_v21 = vsel %vm2365_vm15, %v2358_v35, %v2360_v30  ;;  %v2591_v13 = vpop.permute.xlu1 %2590 }
 0x65b   : > { %2732 = vmatpush1.bf16.msra.mxu0 %v2369_v21 }
 0x65d   : > { %v2593_v14 = vpop.permute.xlu0 %2592 }
 0x65e   : > { %v2598_v32 = vsel %vm2594_vm0, %v2591_v13, %v2593_v14  ;;  %2610 = vst.msk [vmem:[#allocation5 + $0x1a8] sm:$0xff] %vm2212_vm12, %v2593_v14  ;;  %v2589_v12 = vpop.permute.xlu1 %2588 }
 0x65f   : > { %v2597_v25 = vsel %vm2594_vm0, %v2589_v12, %v2591_v13  ;;  %2776 = vmatprep.subr.bf16.mxu1 %v2598_v32 }
 0x660   : > { %2777 = vmatpush1.bf16.msra.mxu1 %v2597_v25 }
 0x661   : > { %v2403_v41 = vpop.permute.xlu0 %2402  ;;  %3157 = vmatprep.subr.bf16.mxu1 %v2637_v40 }
 0x662   : > { %v4384_v29 = vpop.permute.xlu1 %2404 }
 0x663   : > { %v2418_v51 = vsel %vm2416_vm1, %v2403_v41, %v4384_v29  ;;  %3085 = vmatmul.mubr.msk.bf16.vlgmr.msra.gmra.mrb[0].mxu1 %vm2212_vm12, %v4382_v38 }
 0x664   : > { %2733 = vmatprep.subr.bf16.mxu0 %v2418_v51  ;;  %2816 = vmatprep.mubr.bf16.mxu1 %v3422_v27 }
 0x665   : > { %v2401_v0 = vpop.permute.xlu0 %2400 }
 0x666   : > { %v2417_v46 = vsel %vm2416_vm1, %v2401_v0, %v2403_v41  ;;  %v2254_v31 = vpop.permute.xlu1 %2253 }
 0x667   : > { %v2266_v22 = vsel %vm2263_vm13, %v4338_v36, %v2254_v31  ;;  %2734 = vmatpush1.bf16.msra.mxu0 %v2417_v46 }
 0x668   : > { %2278 = vst.msk [vmem:[#allocation5 + $0x10] sm:$0xff] %vm2212_vm12, %v2266_v22 }
 0x669   : > { %v2411_v59 = vpop.permute.xlu0 %2410 }
 0x66a   : > { %v4400_v19 = vpop.permute.xlu1 %2412 }
 0x66b   : > { %v2421_v8 = vsel %vm2416_vm1, %v2411_v59, %v4400_v19  ;;  %3086 = vmatmul.mubr.msk.bf16.gmra.mrb[4].mxu1 %vm2212_vm12, %v4397_v11 }
 0x66c   : > { %2735 = vmatprep.subr.bf16.mxu0 %v2421_v8  ;;  %2859 = vmatprep.mubr.bf16.mxu1 %v4321_v34  ;;  %v3360_v8 = vld [vmem:[%s4523_s10] ss:$12 sps:$4 sm:$0xff]  }
 0x66d   : > { %v2409_v28 = vpop.permute.xlu0 %2408 }
 0x66e   : > { %v2420_v27 = vsel %vm2416_vm1, %v2409_v28, %v2411_v59  ;;  %v2262_v17 = vpop.permute.xlu1 %2261  ;;  %v2661_v28 = vld [vmem:[#allocation5 + $0x190] sm:$0xff] }
 0x66f   : > { %v2269_v20 = vsel %vm2263_vm13, %v4348_v3, %v2262_v17  ;;  %v2613_v49 = vld [vmem:[#allocation5 + $0x10] sm:$0xff]  ;;  %2736 = vmatpush1.bf16.msra.mxu0 %v2420_v27  ;;  %v3363_v27 = vld [vmem:[%s4523_s10 + $0x1c] ss:$12 sps:$4 sm:$0xff]  }
 0x670   : > { %2281 = vst.msk [vmem:[#allocation5 + $0x28] sm:$0xff] %vm2212_vm12, %v2269_v20  ;;  %3158 = vmatpush3.bf16.msra.mxu1 %v2613_v49  ;;  %2737 = vmatprep.subr.bf16.mxu0 %v4239_v37  ;;  %v2664_v17 = vld [vmem:[#allocation5 + $0x1a8] sm:$0xff] }
 0x671   : > { %v2305_v62 = vpop.permute.xlu0 %2304  ;;  %3159 = vmatprep.subr.bf16.mxu1 %v2640_v44  ;;  %v3365_v44 = vld [vmem:[%s4523_s10 + $0x18] ss:$12 sps:$4 sm:$0xff]  }
 0x672   : > { %v2317_v34 = vsel %vm2314_vm14, %v4353_v10, %v2305_v62  ;;  %v2464_v36 = vpop.permute.xlu1 %2463 }
 0x673   : > { %2329 = vst.msk [vmem:[#allocation5 + $0x40] sm:$0xff] %vm2212_vm12, %v2317_v34  ;;  %2484 = vst.msk [vmem:[#allocation5 + $0x100] sm:$0xff] %vm2212_vm12, %v2464_v36  ;;  %2738 = vmatpush1.bf16.msra.mxu0 %v4237_v15 }
 0x674   : > { %2739 = vmatprep.subr.bf16.mxu0 %v4246_v58 }
 0x675   : > { %v2313_v63 = vpop.permute.xlu0 %2312 }
 0x676   : > { %v2320_v1 = vsel %vm2314_vm14, %v4358_v47, %v2313_v63  ;;  %v2470_v2 = vpop.permute.xlu1 %2469 }
 0x677   : > { %2332 = vst.msk [vmem:[#allocation5 + $0x58] sm:$0xff] %vm2212_vm12, %v2320_v1  ;;  %2487 = vst.msk [vmem:[#allocation5 + $0x118] sm:$0xff] %vm2212_vm12, %v2470_v2  ;;  %v2616_v37 = vld [vmem:[#allocation5 + $0x28] sm:$0xff]  ;;  %2740 = vmatpush1.bf16.msra.mxu0 %v4243_v48 }
 0x678   : > { %3160 = vmatpush3.bf16.msra.mxu1 %v2616_v37 }
 0x679   : > { %v2462_v50 = vpop.permute.xlu0 %2461 }
 0x67a   : > { %v2473_v3 = vsel %vm2471_vm2, %v2462_v50, %v2464_v36  ;;  %v2460_v15 = vpop.permute.xlu1 %2459  ;;  %v2643_v4 = vld [vmem:[#allocation5 + $0x100] sm:$0xff] }
 0x67b   : > { %v2619_v58 = vld [vmem:[#allocation5 + $0x40] sm:$0xff]  ;;  %v2472_v5 = vsel %vm2471_vm2, %v2460_v15, %v2462_v50  ;;  %3161 = vmatprep.subr.bf16.mxu1 %v2643_v4  ;;  %2741 = vmatprep.subr.bf16.mxu0 %v2473_v3 }
 0x67c   : > { %3162 = vmatpush3.bf16.msra.mxu1 %v2619_v58  ;;  %2742 = vmatpush1.bf16.msra.mxu0 %v2472_v5 }
 0x67d   : > { %v2356_v6 = vpop.permute.xlu0 %2355 }
 0x67e   : > { %v2368_v9 = vsel %vm2365_vm15, %v4363_v43, %v2356_v6  ;;  %v2505_v10 = vpop.permute.xlu1 %2504  ;;  %v2646_v16 = vld [vmem:[#allocation5 + $0x118] sm:$0xff]  ;;  %v2925_v6 = vld [vmem:[%s3526_s13] sm:$0xff] }
 0x67f   : > { %v2622_v48 = vld [vmem:[#allocation5 + $0x58] sm:$0xff]  ;;  %2380 = vst.msk [vmem:[#allocation5 + $0x70] sm:$0xff] %vm2212_vm12, %v2368_v9  ;;  %2525 = vst.msk [vmem:[#allocation5 + $0x130] sm:$0xff] %vm2212_vm12, %v2505_v10  ;;  %3163 = vmatprep.subr.bf16.mxu1 %v2646_v16 }
 0x680   : > { %3164 = vmatpush3.bf16.msra.mxu1 %v2622_v48 }
 0x681   : > { %v2468_v53 = vpop.permute.xlu0 %2467 }
 0x682   : > { %v2475_v7 = vsel %vm2471_vm2, %v2468_v53, %v2470_v2  ;;  %v2466_v45 = vpop.permute.xlu1 %2465 }
 0x683   : > { %v2474_v47 = vsel %vm2471_vm2, %v2466_v45, %v2468_v53  ;;  %2743 = vmatprep.subr.bf16.mxu0 %v2475_v7  ;;  %v2926_v53 = vld [vmem:[%s3526_s13 + $0x8] sm:$0xff] }
 0x684   : > { %2744 = vmatpush1.bf16.msra.mxu0 %v2474_v47 }
 0x685   : > { %v2364_v39 = vpop.permute.xlu0 %2363 }
 0x686   : > { %v2371_v42 = vsel %vm2365_vm15, %v4371_v57, %v2364_v39  ;;  %v2511_v60 = vpop.permute.xlu1 %2510  ;;  %v2649_v61 = vld [vmem:[#allocation5 + $0x130] sm:$0xff] }
 0x687   : > { %v2625_v43 = vld [vmem:[#allocation5 + $0x70] sm:$0xff]  ;;  %2383 = vst.msk [vmem:[#allocation5 + $0x88] sm:$0xff] %vm2212_vm12, %v2371_v42  ;;  %2528 = vst.msk [vmem:[#allocation5 + $0x148] sm:$0xff] %vm2212_vm12, %v2511_v60  ;;  %3165 = vmatprep.subr.bf16.mxu1 %v2649_v61  ;;  %v2928_v42 = vld [vmem:[%s3526_s13 + $0x18] sm:$0xff] }
 0x688   : > { %3166 = vmatpush3.bf16.msra.mxu1 %v2625_v43 }
 0x689   : > { %v2503_v52 = vpop.permute.xlu0 %2502 }
 0x68a   : > { %v2514_v33 = vsel %vm2512_vm3, %v2503_v52, %v2505_v10  ;;  %v2501_v23 = vpop.permute.xlu1 %2500 }
 0x68b   : > { %v2513_v55 = vsel %vm2512_vm3, %v2501_v23, %v2503_v52  ;;  %2745 = vmatprep.subr.bf16.mxu0 %v2514_v33  ;;  %v2929_v52 = vld [vmem:[%s3526_s13 + $0x20] sm:$0xff] }
 0x68c   : > { %2746 = vmatpush1.bf16.msra.mxu0 %v2513_v55 }
 0x68d   : > { %v2407_v24 = vpop.permute.xlu0 %2406 }
 0x68e   : > { %v2419_v18 = vsel %vm2416_vm1, %v4384_v29, %v2407_v24  ;;  %v2546_v56 = vpop.permute.xlu1 %2545  ;;  %v2652_v54 = vld [vmem:[#allocation5 + $0x148] sm:$0xff] }
 0x68f   : > { %v2628_v30 = vld [vmem:[#allocation5 + $0x88] sm:$0xff]  ;;  %2431 = vst.msk [vmem:[#allocation5 + $0xa0] sm:$0xff] %vm2212_vm12, %v2419_v18  ;;  %2566 = vst.msk [vmem:[#allocation5 + $0x160] sm:$0xff] %vm2212_vm12, %v2546_v56  ;;  %3167 = vmatprep.subr.bf16.mxu1 %v2652_v54 }
 0x690   : > { %3168 = vmatpush3.bf16.msra.mxu1 %v2628_v30 }
 0x691   : > { %v2509_v57 = vpop.permute.xlu0 %2508 }
 0x692   : > { %v2516_v26 = vsel %vm2512_vm3, %v2509_v57, %v2511_v60  ;;  %v2507_v35 = vpop.permute.xlu1 %2506 }
 0x693   : > { %v2515_v21 = vsel %vm2512_vm3, %v2507_v35, %v2509_v57  ;;  %2747 = vmatprep.subr.bf16.mxu0 %v2516_v26 }
 0x694   : > { %2748 = vmatpush1.bf16.msra.mxu0 %v2515_v21 }
 0x695   : > { %v2415_v13 = vpop.permute.xlu0 %2414 }
 0x696   : > { %v2422_v14 = vsel %vm2416_vm1, %v4400_v19, %v2415_v13  ;;  %v2552_v32 = vpop.permute.xlu1 %2551  ;;  %v2655_v12 = vld [vmem:[#allocation5 + $0x160] sm:$0xff] }
 0x697   : > { %v2631_v40 = vld [vmem:[#allocation5 + $0xa0] sm:$0xff]  ;;  %2434 = vst.msk [vmem:[#allocation5 + $0xb8] sm:$0xff] %vm2212_vm12, %v2422_v14  ;;  %2569 = vst.msk [vmem:[#allocation5 + $0x178] sm:$0xff] %vm2212_vm12, %v2552_v32  ;;  %3169 = vmatprep.subr.bf16.mxu1 %v2655_v12 }
 0x698   : > { %3170 = vmatpush3.bf16.msra.mxu1 %v2631_v40  ;;  %v2931_v14 = vld [vmem:[%s3526_s13 + $0x30] sm:$0xff] }
 0x699   : > { %v2544_v25 = vpop.permute.xlu0 %2543 }
 0x69a   : > { %v2555_v41 = vsel %vm2553_vm4, %v2544_v25, %v2546_v56  ;;  %v2542_v29 = vpop.permute.xlu1 %2541 }
 0x69b   : > { %v2554_v51 = vsel %vm2553_vm4, %v2542_v29, %v2544_v25  ;;  %2749 = vmatprep.subr.bf16.mxu0 %v2555_v41  ;;  %v2932_v41 = vld [vmem:[%s3526_s13 + $0x38] sm:$0xff] }
 0x69c   : > { %2750 = vmatpush1.bf16.msra.mxu0 %v2554_v51 }
 0x69d   : > { %v2550_v0 = vpop.permute.xlu0 %2549 }
 0x69e   : > { %v2557_v46 = vsel %vm2553_vm4, %v2550_v0, %v2552_v32  ;;  %v2548_v31 = vpop.permute.xlu1 %2547  ;;  %v2658_v22 = vld [vmem:[#allocation5 + $0x178] sm:$0xff] }
 0x69f   : > { %v2634_v59 = vld [vmem:[#allocation5 + $0xb8] sm:$0xff]  ;;  %v2556_v19 = vsel %vm2553_vm4, %v2548_v31, %v2550_v0  ;;  %3171 = vmatprep.subr.bf16.mxu1 %v2658_v22  ;;  %2751 = vmatprep.subr.bf16.mxu0 %v2557_v46 }
 0x6a0   : > { %3172 = vmatpush3.bf16.msra.mxu1 %v2634_v59  ;;  %2752 = vmatpush1.bf16.msra.mxu0 %v2556_v19  ;;  %v2934_v31 = vld [vmem:[%s3526_s13 + $0x48] sm:$0xff] }
 0x6a1   : > { %3205 = vmatprep.subr.bf16.mxu1 %v2661_v28 }
 0x6a3   : > { %2860 = vmatmul.mubr.bf16.vlgmr.msra.gmra.mrb[8].mxu1 %v3360_v8  ;;  %2754 = vmatmul.mubr.bf16.vlgmr.msra.gmra.mrb[0].mxu0 %v3360_v8  ;;  %v2935_v8 = vld [vmem:[%s3526_s13 + $0x50] sm:$0xff] }
 0x6a4   : > { %3206 = vmatpush3.bf16.msra.mxu1 %v2661_v28  ;;  %2867 = vmatprep.mubr.bf16.mxu1 %v3363_v27 }
 0x6a5   : > { %3207 = vmatprep.subr.bf16.mxu1 %v2664_v17  ;;  %2763 = vmatprep.mubr.bf16.mxu0 %v3363_v27 }
 0x6a8   : > { %3208 = vmatpush3.bf16.msra.mxu1 %v2664_v17 }
 0x6ab   : > { %2868 = vmatmul.mubr.bf16.gmra.mrb[12].mxu1 %v3365_v44  ;;  %2764 = vmatmul.mubr.bf16.gmra.mrb[4].mxu0 %v3365_v44 }
 0x6ac   : > { %3209 = vmatprep.mubr.msk.bf16.mxu1 %vm2212_vm12, %v4382_v38 }
 0x6ae   : > { %v4460_v37 = vpop.permute.xlu0 %2667 }
 0x6af   : > { %v4462_v50 = vpop.permute.xlu1 %2672 }
 0x6b2   : > { %v2683_v18 = vpop.permute.xlu0 %2682 }
 0x6b3   : > { %3210 = vmatmul.mubr.msk.bf16.vlgmr.msra.gmra.mrb[16].mxu1 %vm2212_vm12, %v4397_v11  ;;  %v2678_v55 = vpop.permute.xlu1 %2677 }
 0x736   : > { %v2808_v20 = vpop.f32.mrb[0].mxu1 }
 0x737   : > { %v2810_v49 = vpop.f32.mrb[1].mxu1 }
 0x738   : > { %v2812_v62 = vpop.f32.mrb[2].mxu1 }
 0x739   : > { %v2814_v34 = vpop.f32.mrb[3].mxu1 }
 0x73e   : > { %v2818_v36 = vpop.f32.mrb[4].mxu1 }
 0x73f   : > { %v2820_v63 = vpop.f32.mrb[5].mxu1 }
 0x740   : > { %v2822_v1 = vpop.f32.mrb[6].mxu1 }
 0x741   : > { %v2824_v2 = vpop.f32.mrb[7].mxu1 }
 0x776   : > { %v3173_v3 = vpop.f32.mrb[8].mxu1  ;;  %v2755_v15 = vpop.f32.mrb[0].mxu0 }
 0x777   : > { %v3174_v38 = vpop.f32.mrb[9].mxu1  ;;  %v2756_v11 = vadd.f32 %v2755_v15, %v4460_v37  ;;  %v2757_v4 = vpop.f32.mrb[1].mxu0 }
 0x778   : > { %v3175_v58 = vadd.f32 %v3174_v38, %v3173_v3  ;;  %v3176_v5 = vpop.f32.mrb[10].mxu1  ;;  %v2758_v9 = vadd.f32 %v2757_v4, %v4460_v37  ;;  %v2759_v10 = vpop.f32.mrb[2].mxu0  ;;  %v2927_v3 = vld [vmem:[%s3526_s13 + $0x10] sm:$0xff]  ;;  %v2936_v38 = vld [vmem:[%s3526_s13 + $0x58] sm:$0xff] }
 0x779   : > { %v3177_v16 = vpop.f32.mrb[11].mxu1  ;;  %v2809_v48 = vadd.f32 %v2808_v20, %v2756_v11  ;;  %v2760_v7 = vadd.f32 %v2759_v10, %v4462_v50  ;;  %v2761_v45 = vpop.f32.mrb[3].mxu0 }
 0x77a   : > { %v3178_v47 = vadd.f32 %v3177_v16, %v3176_v5  ;;  %v2811_v39 = vadd.f32 %v2810_v49, %v2758_v9  ;;  %v2762_v60 = vadd.f32 %v2761_v45, %v4462_v50  ;;  %v2933_v49 = vld [vmem:[%s3526_s13 + $0x40] sm:$0xff]  ;;  %v2930_v5 = vld [vmem:[%s3526_s13 + $0x28] sm:$0xff] }
 0x77b   : > { %v2937_v61 = vadd.f32 %v2925_v6, %v2809_v48  ;;  %v2813_v43 = vadd.f32 %v2812_v62, %v2760_v7  ;;  %v2862_v62 = vadd.f32 %v3175_v58, %v4460_v37 }
 0x77c   : > { %v2938_v33 = vadd.f32 %v2926_v53, %v2811_v39  ;;  %v2815_v23 = vadd.f32 %v2814_v34, %v2762_v60  ;;  %v2865_v11 = vadd.f32 %v3178_v47, %v4462_v50 }
 0x77d   : > { %2949 = vst [vmem:[%s3531_s16] sm:$0xff] %v2937_v61  ;;  %v2940_v24 = vadd.f32 %v2928_v42, %v2813_v43 }
 0x77e   : > { %v3179_v56 = vpop.f32.mrb[12].mxu1  ;;  %2950 = vst [vmem:[%s3531_s16 + $0x8] sm:$0xff] %v2938_v33  ;;  %v2941_v54 = vadd.f32 %v2929_v52, %v2815_v23  ;;  %v2765_v30 = vpop.f32.mrb[4].mxu0 }
 0x77f   : > { %v3180_v57 = vpop.f32.mrb[13].mxu1  ;;  %2952 = vst [vmem:[%s3531_s16 + $0x18] sm:$0xff] %v2940_v24  ;;  %v2766_v26 = vadd.f32 %v2765_v30, %v2678_v55  ;;  %v2767_v35 = vpop.f32.mrb[5].mxu0 }
 0x780   : > { %v3181_v21 = vadd.f32 %v3180_v57, %v3179_v56  ;;  %v3182_v13 = vpop.f32.mrb[14].mxu1  ;;  %2953 = vst [vmem:[%s3531_s16 + $0x20] sm:$0xff] %v2941_v54  ;;  %v2768_v32 = vadd.f32 %v2767_v35, %v2678_v55  ;;  %v2769_v12 = vpop.f32.mrb[6].mxu0 }
 0x781   : > { %v3183_v40 = vpop.f32.mrb[15].mxu1  ;;  %v2819_v25 = vadd.f32 %v2818_v36, %v2766_v26  ;;  %v2770_v29 = vadd.f32 %v2769_v12, %v2683_v18  ;;  %v2771_v51 = vpop.f32.mrb[7].mxu0 }
 0x782   : > { %v3184_v0 = vadd.f32 %v3183_v40, %v3182_v13  ;;  %v2821_v46 = vadd.f32 %v2820_v63, %v2768_v32  ;;  %v2772_v22 = vadd.f32 %v2771_v51, %v2683_v18  ;;  %v2870_v17 = vadd.f32 %v3181_v21, %v2678_v55 }
 0x783   : > { %v2943_v59 = vadd.f32 %v2931_v14, %v2819_v25  ;;  %v2823_v19 = vadd.f32 %v2822_v1, %v2770_v29 }
 0x784   : > { %v2944_v28 = vadd.f32 %v2932_v41, %v2821_v46  ;;  %v2825_v27 = vadd.f32 %v2824_v2, %v2772_v22  ;;  %v2873_v36 = vadd.f32 %v3184_v0, %v2683_v18 }
 0x785   : > { %2955 = vst [vmem:[%s3531_s16 + $0x30] sm:$0xff] %v2943_v59  ;;  %v2946_v44 = vadd.f32 %v2934_v31, %v2823_v19 }
 0x786   : > { %v3211_v20 = vpop.f32.mrb[16].mxu1  ;;  %2956 = vst [vmem:[%s3531_s16 + $0x38] sm:$0xff] %v2944_v28  ;;  %v2947_v34 = vadd.f32 %v2935_v8, %v2825_v27 }
 0x787   : > { %v2919_v63 = vadd.f32 %v3211_v20, %v2870_v17  ;;  %v2910_v1 = vpop.f32.mrb[17].mxu1  ;;  %2958 = vst [vmem:[%s3531_s16 + $0x48] sm:$0xff] %v2946_v44 }
 0x788   : > { %v2911_v2 = vadd.f32 %v2910_v1, %v2862_v62  ;;  %v3212_v15 = vpop.f32.mrb[18].mxu1  ;;  %2959 = vst [vmem:[%s3531_s16 + $0x50] sm:$0xff] %v2947_v34 }
 0x789   : > { %v2945_v4 = vadd.f32 %v2933_v49, %v2919_v63  ;;  %v2922_v37 = vadd.f32 %v3212_v15, %v2873_v36  ;;  %v2913_v58 = vpop.f32.mrb[19].mxu1 }
 0x78a   : > { %v2939_v6 = vadd.f32 %v2927_v3, %v2911_v2  ;;  %v2914_v9 = vadd.f32 %v2913_v58, %v2865_v11 }
 0x78b   : > { %2957 = vst.msk [vmem:[%s3531_s16 + $0x40] sm:$0xff] %vm2212_vm12, %v2945_v4  ;;  %v2948_v10 = vadd.f32 %v2936_v38, %v2922_v37 }
 0x78c   : > { %2951 = vst.msk [vmem:[%s3531_s16 + $0x10] sm:$0xff] %vm2212_vm12, %v2939_v6  ;;  %v2942_v16 = vadd.f32 %v2930_v5, %v2914_v9 }
 0x78d   : > { %2960 = vst.msk [vmem:[%s3531_s16 + $0x58] sm:$0xff] %vm2212_vm12, %v2948_v10 }
 0x78e   : > { %2954 = vst.msk [vmem:[%s3531_s16 + $0x28] sm:$0xff] %vm2212_vm12, %v2942_v16 }
 0x78f PF: > { %s22_s25 = sadd.s32 1, %s3404_s25   ;;  %s4547_s21 = smov %s3396_s23 }
 0x790   : > { %p19_p9 = scmp.ge.s32.totalorder %s22_s25, 8   ;;  %s4548_s22 = smov %s3400_s24 }
 0x791   : > { %s4549_s23 = smov %s4552_s26  ;;  %s4550_s24 = smov %s4556_s27 }
 0x792   :  { %21 = sbr.rel (!%p19_p9) target bundleno = 3 (0x3), region = 118 }

</bundles_post_ra>
